<compile_context>
chip_gen: v7x
topology: tpu7x:2x2x1
jax: 0.10.0
libtpu: 0.0.40
codegen_flags: <defaults>
</compile_context>

<pallas_src>
import functools

import numpy as np
import jax
import jax.numpy as jnp
from jax.experimental import pallas as pl
from jax.experimental.pallas import tpu as pltpu


def _pick_tb(batch):
    """Images per grid step.

    TB sits on the sublane axis of the channel-major (response / bbox)
    blocks, so it must be a multiple of 8 (f32 sublane tiling) unless it
    covers the whole batch.  TB=8 gives >= 2 grid steps for B >= 16
    (DMA/compute overlap + v7x megacore sharding) while keeping the per-step
    double-buffered VMEM footprint tiny on every TPU generation.
    """
    if batch >= 16 and batch % 8 == 0:
        return 8
    return batch          # small / ragged batch: single-step fallback


def _yolo_loss_kernel(p_cls_ref, t_cls_ref, t_resp_nat_ref,
                      p_resp_ref, t_resp_ref, p_box_ref, t_box_ref,
                      out_ref, *, bbox_num):
    f32 = jnp.float32

    # ---- per-bbox loop: IoU + fused responsible-box selection + no-object --
    # Carries are 5 dense (TB, HW) arrays; coordinates are sliced directly
    # from the refs so nothing else stays live across loop iterations.
    best_iou = gp_resp = best_off_sq = resp_sum = neg_acc = None
    for j in range(bbox_num):
        t_r = t_resp_ref[j].astype(f32)                     # (TB, HW)
        p_r = p_resp_ref[j].astype(f32)

        # no-object term for this bbox slot, accumulated elementwise
        dr = p_r - t_r
        neg_j = jnp.where(t_r < 1.0, dr * dr, 0.0)

        t_cx = t_box_ref[j, 0].astype(f32)
        t_cy = t_box_ref[j, 1].astype(f32)
        t_w = t_box_ref[j, 2].astype(f32)
        t_h = t_box_ref[j, 3].astype(f32)
        p_cx = p_box_ref[j, 0].astype(f32)
        p_cy = p_box_ref[j, 1].astype(f32)
        p_w = p_box_ref[j, 2].astype(f32)
        p_h = p_box_ref[j, 3].astype(f32)

        # coordinate (offset-form) squared error, pre-summed over the 4 coords
        dx = p_cx - t_cx
        dy = p_cy - t_cy
        dw = p_w - t_w
        dh = p_h - t_h
        off_sq_j = dx * dx + dy * dy + dw * dw + dh * dh

        # corners & IoU (same arithmetic / epsilon as the torch reference)
        t_x1 = t_cx - t_w * 0.5
        t_y1 = t_cy - t_h * 0.5
        t_x2 = t_x1 + t_w
        t_y2 = t_y1 + t_h
        p_x1 = p_cx - p_w * 0.5
        p_y1 = p_cy - p_h * 0.5
        p_x2 = p_x1 + p_w
        p_y2 = p_y1 + p_h

        w_i = jnp.maximum(jnp.minimum(t_x2, p_x2) - jnp.maximum(t_x1, p_x1), 0.0)
        h_i = jnp.maximum(jnp.minimum(t_y2, p_y2) - jnp.maximum(t_y1, p_y1), 0.0)
        inter = w_i * h_i
        area_t = (t_x2 - t_x1) * (t_y2 - t_y1)
        area_p = (p_x2 - p_x1) * (p_y2 - p_y1)
        # Exact divide (approx reciprocal could flip argmax ties).
        iou_j = inter / (area_t + area_p - inter + 0.0001)

        if j == 0:
            best_iou, gp_resp, best_off_sq = iou_j, p_r, off_sq_j
            resp_sum, neg_acc = t_r, neg_j
        else:
            better = iou_j > best_iou      # strict: keeps the first max == argmax
            best_iou = jnp.where(better, iou_j, best_iou)
            gp_resp = jnp.where(better, p_r, gp_resp)
            best_off_sq = jnp.where(better, off_sq_j, best_off_sq)
            resp_sum = resp_sum + t_r
            neg_acc = neg_acc + neg_j

    pos = (resp_sum > 0.9).astype(f32)          # positive-cell mask (TB, HW)
    d_resp = gp_resp - best_iou
    loss_resp = jnp.sum(pos * d_resp * d_resp)  # one reduce per loss term
    loss_off = jnp.sum(pos * best_off_sq)
    loss_neg = jnp.sum(neg_acc)

    # ---- classification loss straight on the native [TB, cls, HW] blocks ---
    # (no wrapper transpose for the largest tensors).  The positive mask is
    # rebuilt in (TB, 1, HW) form from the tiny native label_response block so
    # it broadcasts along the class (sublane) axis without any relayout.
    r3 = t_resp_nat_ref[:, 0:1, :].astype(f32)
    for j in range(1, bbox_num):
        r3 = r3 + t_resp_nat_ref[:, j:j + 1, :].astype(f32)
    pos3 = (r3 > 0.9).astype(f32)                              # (TB, 1, HW)
    d_cls = p_cls_ref[...].astype(f32) - t_cls_ref[...].astype(f32)
    loss_cls = jnp.sum(pos3 * (d_cls * d_cls))

    # ---- lane-dense (8, 128) output tile: 4 partial sums in lanes 0..3 -----
    sub = jax.lax.broadcasted_iota(jnp.int32, (8, 128), 0)
    lane = jax.lax.broadcasted_iota(jnp.int32, (8, 128), 1)
    row0 = sub == 0
    tile = jnp.where(row0 & (lane == 0), loss_resp, 0.0)
    tile = tile + jnp.where(row0 & (lane == 1), loss_neg, 0.0)
    tile = tile + jnp.where(row0 & (lane == 2), loss_cls, 0.0)
    tile = tile + jnp.where(row0 & (lane == 3), loss_off, 0.0)
    out_ref[0] = tile


@jax.jit
def yolov1_loss_pallas(pred_cls, pred_response, pred_bboxes,
                       label_cls, label_response, label_bboxes,
                       l_coord, l_obj, l_noobj):
    B, cls_num, H, W = pred_cls.shape
    bbox_num = pred_response.shape[1]
    HW = H * W

    TB = _pick_tb(B)
    num_blocks = B // TB

    # Native [B, C, HW] views are free reshapes (contiguous trailing dims) —
    # the big class tensors are never copied in HBM.  Only the small response
    # / bbox tensors (~1/3 of the bytes) are re-laid out channel-major so that
    # per-box / per-coordinate slices inside the kernel are dense (TB, HW)
    # tiles with the batch on sublanes.
    p_cls = pred_cls.reshape(B, cls_num, HW)
    t_cls = label_cls.reshape(B, cls_num, HW)
    t_resp_nat = label_response.reshape(B, bbox_num, HW)

    p_resp_cm = pred_response.reshape(B, bbox_num, HW).transpose(1, 0, 2)
    t_resp_cm = t_resp_nat.transpose(1, 0, 2)
    p_box_cm = pred_bboxes.reshape(B, bbox_num, 4, HW).transpose(1, 2, 0, 3)
    t_box_cm = label_bboxes.reshape(B, bbox_num, 4, HW).transpose(1, 2, 0, 3)

    cls_spec = pl.BlockSpec((TB, cls_num, HW), lambda b: (b, 0, 0))
    resp_nat_spec = pl.BlockSpec((TB, bbox_num, HW), lambda b: (b, 0, 0))
    resp_cm_spec = pl.BlockSpec((bbox_num, TB, HW), lambda b: (0, b, 0))
    box_cm_spec = pl.BlockSpec((bbox_num, 4, TB, HW), lambda b: (0, 0, b, 0))

    kernel = functools.partial(_yolo_loss_kernel, bbox_num=bbox_num)

    # Per-step double-buffered VMEM ~= (2*cls_num + 3*bbox_num + 8*bbox_num)
    # * TB * HW * 4 B * 2 — well under the default scoped limit at typical
    # YOLO feature-map sizes on v5e / v6e / v7x, so no vmem_limit override.
    partial_sums = pl.pallas_call(
        kernel,
        out_shape=jax.ShapeDtypeStruct((num_blocks, 8, 128), jnp.float32),
        grid_spec=pltpu.PrefetchScalarGridSpec(
            num_scalar_prefetch=0,
            grid=(num_blocks,),
            in_specs=[cls_spec, cls_spec, resp_nat_spec,
                      resp_cm_spec, resp_cm_spec, box_cm_spec, box_cm_spec],
            out_specs=pl.BlockSpec((1, 8, 128), lambda b: (b, 0, 0)),
        ),
        compiler_params=pltpu.CompilerParams(
            dimension_semantics=("parallel",)),
    )(p_cls, t_cls, t_resp_nat, p_resp_cm, t_resp_cm, p_box_cm, t_box_cm)

    sums = jnp.sum(partial_sums[:, 0, :4], axis=0)       # (4,)
    Bf = jnp.float32(B)
    return {
        'pObj': sums[0] / Bf * l_obj,
        'nObj': sums[1] / Bf * l_noobj,
        'cls': sums[2] / Bf,
        'offset': sums[3] / Bf * l_coord,
    }


def yolov1_loss_ref(pred_cls, pred_response, pred_bboxes,
                    label_cls, label_response, label_bboxes,
                    l_coord, l_obj, l_noobj):
    """Plain-JAX reference (same semantics as the torch forward)."""
    B, cls_num, H, W = pred_cls.shape
    bbox_num = pred_response.shape[1]
    pos = (jnp.sum(label_response, axis=1, keepdims=True) > 0.9).astype(jnp.float32)
    loss_cls = jnp.sum(pos * jnp.sum((pred_cls - label_cls) ** 2, axis=1, keepdims=True))

    tb = label_bboxes.reshape(B, bbox_num, 4, H, W)
    pb = pred_bboxes.reshape(B, bbox_num, 4, H, W)

    def corners(bx):
        x1 = bx[:, :, 0] - bx[:, :, 2] / 2
        y1 = bx[:, :, 1] - bx[:, :, 3] / 2
        return x1, y1, x1 + bx[:, :, 2], y1 + bx[:, :, 3]

    tx1, ty1, tx2, ty2 = corners(tb)
    px1, py1, px2, py2 = corners(pb)
    wi = jnp.maximum(jnp.minimum(tx2, px2) - jnp.maximum(tx1, px1), 0.0)
    hi = jnp.maximum(jnp.minimum(ty2, py2) - jnp.maximum(ty1, py1), 0.0)
    inter = wi * hi
    a1 = (tx2 - tx1) * (ty2 - ty1)
    a2 = (px2 - px1) * (py2 - py1)
    iou = inter / (a1 + a2 - inter + 0.0001)                  # (B, bbox, H, W)

    best = jnp.argmax(iou, axis=1)                            # (B, H, W)
    best_iou = jnp.take_along_axis(iou, best[:, None], axis=1)[:, 0]
    gp_resp = jnp.take_along_axis(pred_response, best[:, None], axis=1)[:, 0]
    posm = pos[:, 0]
    loss_resp = jnp.sum(posm * (gp_resp - best_iou) ** 2)

    gp_box = jnp.take_along_axis(pb, best[:, None, None], axis=1)[:, 0]
    gt_box = jnp.take_along_axis(tb, best[:, None, None], axis=1)[:, 0]
    loss_off = jnp.sum(posm[:, None] * (gp_box - gt_box) ** 2)

    negm = (label_response < 1.0).astype(jnp.float32)
    loss_neg = jnp.sum(negm * (pred_response - label_response) ** 2)

    return {
        'pObj': loss_resp / B * l_obj,
        'nObj': loss_neg / B * l_noobj,
        'cls': loss_cls / B,
        'offset': loss_off / B * l_coord,
    }


def _make_inputs(key, B, cls_num, bbox_num, H, W):
    k1, k2, k3, k4, k5, k6 = jax.random.split(key, 6)
    # Predictions (as if produced by the network heads).
    pred_cls = jax.random.uniform(k1, (B, cls_num, H, W), jnp.float32)
    pred_response = jax.random.uniform(k2, (B, bbox_num, H, W), jnp.float32)
    pred_bboxes = jax.random.uniform(k3, (B, bbox_num * 4, H, W), jnp.float32)
    # Synthetic encoded targets (what _prepare_target / yolo_encoder would build).
    # TODO(synk): yolo_encoder operates on CPU boxlists from the dataset; here the
    # encoded dense label tensors are synthesized directly.
    obj_prob = jax.random.uniform(k4, (B, 1, H, W), jnp.float32)
    pos = (obj_prob < 0.12).astype(jnp.float32)                 # ~12% positive cells
    label_response = jnp.broadcast_to(pos, (B, bbox_num, H, W)) * 1.0
    cls_idx = jax.random.randint(k5, (B, 1, H, W), 0, cls_num)
    onehot = (jnp.arange(cls_num)[None, :, None, None] == cls_idx).astype(jnp.float32)
    label_cls = onehot * pos
    label_bboxes = jax.random.uniform(k6, (B, bbox_num * 4, H, W), jnp.float32) * pos
    return (pred_cls, pred_response, pred_bboxes,
            label_cls, label_response, label_bboxes)


if __name__ == "__main__":
    l_coord, l_obj, l_noobj = 5.0, 1.0, 0.5
    key = jax.random.PRNGKey(0)

    # Config 1 exercises the multi-block pipelined path (TB=8, 2 grid steps,
    # megacore-shardable); config 2 exercises the small-batch single-block
    # fallback (TB == B).
    configs = [
        dict(B=16, cls_num=4, bbox_num=2, H=16, W=16),
        dict(B=2, cls_num=4, bbox_num=2, H=16, W=16),
    ]
    for cfg in configs:
        key, sub = jax.random.split(key)
        inputs = _make_inputs(sub, **cfg)

        out = yolov1_loss_pallas(*inputs, l_coord, l_obj, l_noobj)
        out = jax.tree_util.tree_map(jax.block_until_ready, out)

        ref = yolov1_loss_ref(*inputs, l_coord, l_obj, l_noobj)
        for name in ('pObj', 'nObj', 'cls', 'offset'):
            np.testing.assert_allclose(np.asarray(out[name]), np.asarray(ref[name]),
                                       rtol=1e-3, atol=1e-4)

    print("KERNEL_OK")
</pallas_src>

<mosaic_0001>
module attributes {stable_mosaic.version = 11 : i64} {
  func.func @_yolo_loss_kernel(%arg0: i32, %arg1: memref<8x4x256xf32, #tpu.memory_space<vmem>>, %arg2: memref<8x4x256xf32, #tpu.memory_space<vmem>>, %arg3: memref<8x2x256xf32, #tpu.memory_space<vmem>>, %arg4: memref<2x8x256xf32, #tpu.memory_space<vmem>>, %arg5: memref<2x8x256xf32, #tpu.memory_space<vmem>>, %arg6: memref<2x4x8x256xf32, #tpu.memory_space<vmem>>, %arg7: memref<2x4x8x256xf32, #tpu.memory_space<vmem>>, %arg8: memref<1x8x128xf32, #tpu.memory_space<vmem>>) attributes {dimension_semantics = [#tpu.dimension_semantics<parallel>], iteration_bounds = array<i64: 2>, scalar_prefetch = 0 : i64, scratch_operands = 0 : i64, tpu.core_type = #tpu.core_type<tc>, window_params = [{transform_indices = @transform_0, window_bounds = array<i64: 8, 4, 256>}, {transform_indices = @transform_1, window_bounds = array<i64: 8, 4, 256>}, {transform_indices = @transform_2, window_bounds = array<i64: 8, 2, 256>}, {transform_indices = @transform_3, window_bounds = array<i64: 2, 8, 256>}, {transform_indices = @transform_4, window_bounds = array<i64: 2, 8, 256>}, {transform_indices = @transform_5, window_bounds = array<i64: 2, 4, 8, 256>}, {transform_indices = @transform_6, window_bounds = array<i64: 2, 4, 8, 256>}, {transform_indices = @transform_7, window_bounds = array<i64: 1, 8, 128>}]} {
    %c0 = arith.constant 0 : index
    %c0_0 = arith.constant 0 : index
    %c0_1 = arith.constant 0 : index
    %0 = vector.load %arg5[%c0, %c0_0, %c0_1] : memref<2x8x256xf32, #tpu.memory_space<vmem>>, vector<1x8x256xf32>
    %1 = vector.shape_cast %0 : vector<1x8x256xf32> to vector<8x256xf32>
    %c0_2 = arith.constant 0 : index
    %c0_3 = arith.constant 0 : index
    %c0_4 = arith.constant 0 : index
    %2 = vector.load %arg4[%c0_2, %c0_3, %c0_4] : memref<2x8x256xf32, #tpu.memory_space<vmem>>, vector<1x8x256xf32>
    %3 = vector.shape_cast %2 : vector<1x8x256xf32> to vector<8x256xf32>
    %4 = arith.subf %3, %1 : vector<8x256xf32>
    %cst = arith.constant 1.000000e+00 : f32
    %5 = vector.broadcast %cst : f32 to vector<8x256xf32>
    %6 = arith.cmpf olt, %1, %5 : vector<8x256xf32>
    %7 = arith.mulf %4, %4 : vector<8x256xf32>
    %cst_5 = arith.constant 0.000000e+00 : f32
    %8 = vector.broadcast %cst_5 : f32 to vector<8x256xf32>
    %9 = arith.select %6, %7, %8 : vector<8x256xi1>, vector<8x256xf32>
    %c0_6 = arith.constant 0 : index
    %c0_7 = arith.constant 0 : index
    %c0_8 = arith.constant 0 : index
    %c0_9 = arith.constant 0 : index
    %10 = vector.load %arg7[%c0_6, %c0_7, %c0_8, %c0_9] : memref<2x4x8x256xf32, #tpu.memory_space<vmem>>, vector<1x1x8x256xf32>
    %11 = vector.shape_cast %10 : vector<1x1x8x256xf32> to vector<8x256xf32>
    %c0_10 = arith.constant 0 : index
    %c1 = arith.constant 1 : index
    %c0_11 = arith.constant 0 : index
    %c0_12 = arith.constant 0 : index
    %12 = vector.load %arg7[%c0_10, %c1, %c0_11, %c0_12] : memref<2x4x8x256xf32, #tpu.memory_space<vmem>>, vector<1x1x8x256xf32>
    %13 = vector.shape_cast %12 : vector<1x1x8x256xf32> to vector<8x256xf32>
    %c0_13 = arith.constant 0 : index
    %c2 = arith.constant 2 : index
    %c0_14 = arith.constant 0 : index
    %c0_15 = arith.constant 0 : index
    %14 = vector.load %arg7[%c0_13, %c2, %c0_14, %c0_15] : memref<2x4x8x256xf32, #tpu.memory_space<vmem>>, vector<1x1x8x256xf32>
    %15 = vector.shape_cast %14 : vector<1x1x8x256xf32> to vector<8x256xf32>
    %c0_16 = arith.constant 0 : index
    %c3 = arith.constant 3 : index
    %c0_17 = arith.constant 0 : index
    %c0_18 = arith.constant 0 : index
    %16 = vector.load %arg7[%c0_16, %c3, %c0_17, %c0_18] : memref<2x4x8x256xf32, #tpu.memory_space<vmem>>, vector<1x1x8x256xf32>
    %17 = vector.shape_cast %16 : vector<1x1x8x256xf32> to vector<8x256xf32>
    %c0_19 = arith.constant 0 : index
    %c0_20 = arith.constant 0 : index
    %c0_21 = arith.constant 0 : index
    %c0_22 = arith.constant 0 : index
    %18 = vector.load %arg6[%c0_19, %c0_20, %c0_21, %c0_22] : memref<2x4x8x256xf32, #tpu.memory_space<vmem>>, vector<1x1x8x256xf32>
    %19 = vector.shape_cast %18 : vector<1x1x8x256xf32> to vector<8x256xf32>
    %c0_23 = arith.constant 0 : index
    %c1_24 = arith.constant 1 : index
    %c0_25 = arith.constant 0 : index
    %c0_26 = arith.constant 0 : index
    %20 = vector.load %arg6[%c0_23, %c1_24, %c0_25, %c0_26] : memref<2x4x8x256xf32, #tpu.memory_space<vmem>>, vector<1x1x8x256xf32>
    %21 = vector.shape_cast %20 : vector<1x1x8x256xf32> to vector<8x256xf32>
    %c0_27 = arith.constant 0 : index
    %c2_28 = arith.constant 2 : index
    %c0_29 = arith.constant 0 : index
    %c0_30 = arith.constant 0 : index
    %22 = vector.load %arg6[%c0_27, %c2_28, %c0_29, %c0_30] : memref<2x4x8x256xf32, #tpu.memory_space<vmem>>, vector<1x1x8x256xf32>
    %23 = vector.shape_cast %22 : vector<1x1x8x256xf32> to vector<8x256xf32>
    %c0_31 = arith.constant 0 : index
    %c3_32 = arith.constant 3 : index
    %c0_33 = arith.constant 0 : index
    %c0_34 = arith.constant 0 : index
    %24 = vector.load %arg6[%c0_31, %c3_32, %c0_33, %c0_34] : memref<2x4x8x256xf32, #tpu.memory_space<vmem>>, vector<1x1x8x256xf32>
    %25 = vector.shape_cast %24 : vector<1x1x8x256xf32> to vector<8x256xf32>
    %26 = arith.subf %19, %11 : vector<8x256xf32>
    %27 = arith.subf %21, %13 : vector<8x256xf32>
    %28 = arith.subf %23, %15 : vector<8x256xf32>
    %29 = arith.subf %25, %17 : vector<8x256xf32>
    %30 = arith.mulf %26, %26 : vector<8x256xf32>
    %31 = arith.mulf %27, %27 : vector<8x256xf32>
    %32 = arith.addf %30, %31 : vector<8x256xf32>
    %33 = arith.mulf %28, %28 : vector<8x256xf32>
    %34 = arith.addf %32, %33 : vector<8x256xf32>
    %35 = arith.mulf %29, %29 : vector<8x256xf32>
    %36 = arith.addf %34, %35 : vector<8x256xf32>
    %cst_35 = arith.constant 5.000000e-01 : f32
    %37 = vector.broadcast %cst_35 : f32 to vector<8x256xf32>
    %38 = arith.mulf %15, %37 : vector<8x256xf32>
    %39 = arith.subf %11, %38 : vector<8x256xf32>
    %cst_36 = arith.constant 5.000000e-01 : f32
    %40 = vector.broadcast %cst_36 : f32 to vector<8x256xf32>
    %41 = arith.mulf %17, %40 : vector<8x256xf32>
    %42 = arith.subf %13, %41 : vector<8x256xf32>
    %43 = arith.addf %39, %15 : vector<8x256xf32>
    %44 = arith.addf %42, %17 : vector<8x256xf32>
    %cst_37 = arith.constant 5.000000e-01 : f32
    %45 = vector.broadcast %cst_37 : f32 to vector<8x256xf32>
    %46 = arith.mulf %23, %45 : vector<8x256xf32>
    %47 = arith.subf %19, %46 : vector<8x256xf32>
    %cst_38 = arith.constant 5.000000e-01 : f32
    %48 = vector.broadcast %cst_38 : f32 to vector<8x256xf32>
    %49 = arith.mulf %25, %48 : vector<8x256xf32>
    %50 = arith.subf %21, %49 : vector<8x256xf32>
    %51 = arith.addf %47, %23 : vector<8x256xf32>
    %52 = arith.addf %50, %25 : vector<8x256xf32>
    %53 = arith.minimumf %43, %51 : vector<8x256xf32>
    %54 = arith.maximumf %39, %47 : vector<8x256xf32>
    %55 = arith.subf %53, %54 : vector<8x256xf32>
    %cst_39 = arith.constant 0.000000e+00 : f32
    %56 = vector.broadcast %cst_39 : f32 to vector<8x256xf32>
    %57 = arith.maximumf %55, %56 : vector<8x256xf32>
    %58 = arith.minimumf %44, %52 : vector<8x256xf32>
    %59 = arith.maximumf %42, %50 : vector<8x256xf32>
    %60 = arith.subf %58, %59 : vector<8x256xf32>
    %cst_40 = arith.constant 0.000000e+00 : f32
    %61 = vector.broadcast %cst_40 : f32 to vector<8x256xf32>
    %62 = arith.maximumf %60, %61 : vector<8x256xf32>
    %63 = arith.mulf %57, %62 : vector<8x256xf32>
    %64 = arith.subf %43, %39 : vector<8x256xf32>
    %65 = arith.subf %44, %42 : vector<8x256xf32>
    %66 = arith.mulf %64, %65 : vector<8x256xf32>
    %67 = arith.subf %51, %47 : vector<8x256xf32>
    %68 = arith.subf %52, %50 : vector<8x256xf32>
    %69 = arith.mulf %67, %68 : vector<8x256xf32>
    %70 = arith.addf %66, %69 : vector<8x256xf32>
    %71 = arith.subf %70, %63 : vector<8x256xf32>
    %cst_41 = arith.constant 9.99999974E-5 : f32
    %72 = vector.broadcast %cst_41 : f32 to vector<8x256xf32>
    %73 = arith.addf %71, %72 : vector<8x256xf32>
    %74 = arith.divf %63, %73 : vector<8x256xf32>
    %c1_42 = arith.constant 1 : index
    %c0_43 = arith.constant 0 : index
    %c0_44 = arith.constant 0 : index
    %75 = vector.load %arg5[%c1_42, %c0_43, %c0_44] : memref<2x8x256xf32, #tpu.memory_space<vmem>>, vector<1x8x256xf32>
    %76 = vector.shape_cast %75 : vector<1x8x256xf32> to vector<8x256xf32>
    %c1_45 = arith.constant 1 : index
    %c0_46 = arith.constant 0 : index
    %c0_47 = arith.constant 0 : index
    %77 = vector.load %arg4[%c1_45, %c0_46, %c0_47] : memref<2x8x256xf32, #tpu.memory_space<vmem>>, vector<1x8x256xf32>
    %78 = vector.shape_cast %77 : vector<1x8x256xf32> to vector<8x256xf32>
    %79 = arith.subf %78, %76 : vector<8x256xf32>
    %cst_48 = arith.constant 1.000000e+00 : f32
    %80 = vector.broadcast %cst_48 : f32 to vector<8x256xf32>
    %81 = arith.cmpf olt, %76, %80 : vector<8x256xf32>
    %82 = arith.mulf %79, %79 : vector<8x256xf32>
    %cst_49 = arith.constant 0.000000e+00 : f32
    %83 = vector.broadcast %cst_49 : f32 to vector<8x256xf32>
    %84 = arith.select %81, %82, %83 : vector<8x256xi1>, vector<8x256xf32>
    %c1_50 = arith.constant 1 : index
    %c0_51 = arith.constant 0 : index
    %c0_52 = arith.constant 0 : index
    %c0_53 = arith.constant 0 : index
    %85 = vector.load %arg7[%c1_50, %c0_51, %c0_52, %c0_53] : memref<2x4x8x256xf32, #tpu.memory_space<vmem>>, vector<1x1x8x256xf32>
    %86 = vector.shape_cast %85 : vector<1x1x8x256xf32> to vector<8x256xf32>
    %c1_54 = arith.constant 1 : index
    %c1_55 = arith.constant 1 : index
    %c0_56 = arith.constant 0 : index
    %c0_57 = arith.constant 0 : index
    %87 = vector.load %arg7[%c1_54, %c1_55, %c0_56, %c0_57] : memref<2x4x8x256xf32, #tpu.memory_space<vmem>>, vector<1x1x8x256xf32>
    %88 = vector.shape_cast %87 : vector<1x1x8x256xf32> to vector<8x256xf32>
    %c1_58 = arith.constant 1 : index
    %c2_59 = arith.constant 2 : index
    %c0_60 = arith.constant 0 : index
    %c0_61 = arith.constant 0 : index
    %89 = vector.load %arg7[%c1_58, %c2_59, %c0_60, %c0_61] : memref<2x4x8x256xf32, #tpu.memory_space<vmem>>, vector<1x1x8x256xf32>
    %90 = vector.shape_cast %89 : vector<1x1x8x256xf32> to vector<8x256xf32>
    %c1_62 = arith.constant 1 : index
    %c3_63 = arith.constant 3 : index
    %c0_64 = arith.constant 0 : index
    %c0_65 = arith.constant 0 : index
    %91 = vector.load %arg7[%c1_62, %c3_63, %c0_64, %c0_65] : memref<2x4x8x256xf32, #tpu.memory_space<vmem>>, vector<1x1x8x256xf32>
    %92 = vector.shape_cast %91 : vector<1x1x8x256xf32> to vector<8x256xf32>
    %c1_66 = arith.constant 1 : index
    %c0_67 = arith.constant 0 : index
    %c0_68 = arith.constant 0 : index
    %c0_69 = arith.constant 0 : index
    %93 = vector.load %arg6[%c1_66, %c0_67, %c0_68, %c0_69] : memref<2x4x8x256xf32, #tpu.memory_space<vmem>>, vector<1x1x8x256xf32>
    %94 = vector.shape_cast %93 : vector<1x1x8x256xf32> to vector<8x256xf32>
    %c1_70 = arith.constant 1 : index
    %c1_71 = arith.constant 1 : index
    %c0_72 = arith.constant 0 : index
    %c0_73 = arith.constant 0 : index
    %95 = vector.load %arg6[%c1_70, %c1_71, %c0_72, %c0_73] : memref<2x4x8x256xf32, #tpu.memory_space<vmem>>, vector<1x1x8x256xf32>
    %96 = vector.shape_cast %95 : vector<1x1x8x256xf32> to vector<8x256xf32>
    %c1_74 = arith.constant 1 : index
    %c2_75 = arith.constant 2 : index
    %c0_76 = arith.constant 0 : index
    %c0_77 = arith.constant 0 : index
    %97 = vector.load %arg6[%c1_74, %c2_75, %c0_76, %c0_77] : memref<2x4x8x256xf32, #tpu.memory_space<vmem>>, vector<1x1x8x256xf32>
    %98 = vector.shape_cast %97 : vector<1x1x8x256xf32> to vector<8x256xf32>
    %c1_78 = arith.constant 1 : index
    %c3_79 = arith.constant 3 : index
    %c0_80 = arith.constant 0 : index
    %c0_81 = arith.constant 0 : index
    %99 = vector.load %arg6[%c1_78, %c3_79, %c0_80, %c0_81] : memref<2x4x8x256xf32, #tpu.memory_space<vmem>>, vector<1x1x8x256xf32>
    %100 = vector.shape_cast %99 : vector<1x1x8x256xf32> to vector<8x256xf32>
    %101 = arith.subf %94, %86 : vector<8x256xf32>
    %102 = arith.subf %96, %88 : vector<8x256xf32>
    %103 = arith.subf %98, %90 : vector<8x256xf32>
    %104 = arith.subf %100, %92 : vector<8x256xf32>
    %105 = arith.mulf %101, %101 : vector<8x256xf32>
    %106 = arith.mulf %102, %102 : vector<8x256xf32>
    %107 = arith.addf %105, %106 : vector<8x256xf32>
    %108 = arith.mulf %103, %103 : vector<8x256xf32>
    %109 = arith.addf %107, %108 : vector<8x256xf32>
    %110 = arith.mulf %104, %104 : vector<8x256xf32>
    %111 = arith.addf %109, %110 : vector<8x256xf32>
    %cst_82 = arith.constant 5.000000e-01 : f32
    %112 = vector.broadcast %cst_82 : f32 to vector<8x256xf32>
    %113 = arith.mulf %90, %112 : vector<8x256xf32>
    %114 = arith.subf %86, %113 : vector<8x256xf32>
    %cst_83 = arith.constant 5.000000e-01 : f32
    %115 = vector.broadcast %cst_83 : f32 to vector<8x256xf32>
    %116 = arith.mulf %92, %115 : vector<8x256xf32>
    %117 = arith.subf %88, %116 : vector<8x256xf32>
    %118 = arith.addf %114, %90 : vector<8x256xf32>
    %119 = arith.addf %117, %92 : vector<8x256xf32>
    %cst_84 = arith.constant 5.000000e-01 : f32
    %120 = vector.broadcast %cst_84 : f32 to vector<8x256xf32>
    %121 = arith.mulf %98, %120 : vector<8x256xf32>
    %122 = arith.subf %94, %121 : vector<8x256xf32>
    %cst_85 = arith.constant 5.000000e-01 : f32
    %123 = vector.broadcast %cst_85 : f32 to vector<8x256xf32>
    %124 = arith.mulf %100, %123 : vector<8x256xf32>
    %125 = arith.subf %96, %124 : vector<8x256xf32>
    %126 = arith.addf %122, %98 : vector<8x256xf32>
    %127 = arith.addf %125, %100 : vector<8x256xf32>
    %128 = arith.minimumf %118, %126 : vector<8x256xf32>
    %129 = arith.maximumf %114, %122 : vector<8x256xf32>
    %130 = arith.subf %128, %129 : vector<8x256xf32>
    %cst_86 = arith.constant 0.000000e+00 : f32
    %131 = vector.broadcast %cst_86 : f32 to vector<8x256xf32>
    %132 = arith.maximumf %130, %131 : vector<8x256xf32>
    %133 = arith.minimumf %119, %127 : vector<8x256xf32>
    %134 = arith.maximumf %117, %125 : vector<8x256xf32>
    %135 = arith.subf %133, %134 : vector<8x256xf32>
    %cst_87 = arith.constant 0.000000e+00 : f32
    %136 = vector.broadcast %cst_87 : f32 to vector<8x256xf32>
    %137 = arith.maximumf %135, %136 : vector<8x256xf32>
    %138 = arith.mulf %132, %137 : vector<8x256xf32>
    %139 = arith.subf %118, %114 : vector<8x256xf32>
    %140 = arith.subf %119, %117 : vector<8x256xf32>
    %141 = arith.mulf %139, %140 : vector<8x256xf32>
    %142 = arith.subf %126, %122 : vector<8x256xf32>
    %143 = arith.subf %127, %125 : vector<8x256xf32>
    %144 = arith.mulf %142, %143 : vector<8x256xf32>
    %145 = arith.addf %141, %144 : vector<8x256xf32>
    %146 = arith.subf %145, %138 : vector<8x256xf32>
    %cst_88 = arith.constant 9.99999974E-5 : f32
    %147 = vector.broadcast %cst_88 : f32 to vector<8x256xf32>
    %148 = arith.addf %146, %147 : vector<8x256xf32>
    %149 = arith.divf %138, %148 : vector<8x256xf32>
    %150 = arith.cmpf ogt, %149, %74 : vector<8x256xf32>
    %151 = arith.select %150, %149, %74 : vector<8x256xi1>, vector<8x256xf32>
    %152 = arith.select %150, %78, %3 : vector<8x256xi1>, vector<8x256xf32>
    %153 = arith.select %150, %111, %36 : vector<8x256xi1>, vector<8x256xf32>
    %154 = arith.addf %1, %76 : vector<8x256xf32>
    %155 = arith.addf %9, %84 : vector<8x256xf32>
    %cst_89 = arith.constant 0.899999976 : f32
    %156 = vector.broadcast %cst_89 : f32 to vector<8x256xf32>
    %157 = arith.cmpf ogt, %154, %156 : vector<8x256xf32>
    %158 = arith.extui %157 : vector<8x256xi1> to vector<8x256xi32>
    %159 = arith.sitofp %158 : vector<8x256xi32> to vector<8x256xf32>
    %160 = arith.subf %152, %151 : vector<8x256xf32>
    %161 = arith.mulf %159, %160 : vector<8x256xf32>
    %162 = arith.mulf %161, %160 : vector<8x256xf32>
    %163 = vector.shape_cast %162 : vector<8x256xf32> to vector<1x8x256xf32>
    %cst_90 = arith.constant dense<0.000000e+00> : vector<1xf32>
    %164 = vector.multi_reduction <add>, %163, %cst_90 [1, 2] : vector<1x8x256xf32> to vector<1xf32>
    %165 = vector.shape_cast %164 : vector<1xf32> to vector<1x1x1xf32>
    %166 = vector.extract %165[0, 0, 0] : f32 from vector<1x1x1xf32>
    %167 = arith.mulf %159, %153 : vector<8x256xf32>
    %168 = vector.shape_cast %167 : vector<8x256xf32> to vector<1x8x256xf32>
    %cst_91 = arith.constant dense<0.000000e+00> : vector<1xf32>
    %169 = vector.multi_reduction <add>, %168, %cst_91 [1, 2] : vector<1x8x256xf32> to vector<1xf32>
    %170 = vector.shape_cast %169 : vector<1xf32> to vector<1x1x1xf32>
    %171 = vector.extract %170[0, 0, 0] : f32 from vector<1x1x1xf32>
    %172 = vector.shape_cast %155 : vector<8x256xf32> to vector<1x8x256xf32>
    %cst_92 = arith.constant dense<0.000000e+00> : vector<1xf32>
    %173 = vector.multi_reduction <add>, %172, %cst_92 [1, 2] : vector<1x8x256xf32> to vector<1xf32>
    %174 = vector.shape_cast %173 : vector<1xf32> to vector<1x1x1xf32>
    %175 = vector.extract %174[0, 0, 0] : f32 from vector<1x1x1xf32>
    %c0_93 = arith.constant 0 : index
    %c0_94 = arith.constant 0 : index
    %c0_95 = arith.constant 0 : index
    %176 = vector.load %arg3[%c0_93, %c0_94, %c0_95] : memref<8x2x256xf32, #tpu.memory_space<vmem>>, vector<8x1x256xf32>
    %c0_96 = arith.constant 0 : index
    %c1_97 = arith.constant 1 : index
    %c0_98 = arith.constant 0 : index
    %177 = vector.load %arg3[%c0_96, %c1_97, %c0_98] : memref<8x2x256xf32, #tpu.memory_space<vmem>>, vector<8x1x256xf32>
    %178 = arith.addf %176, %177 : vector<8x1x256xf32>
    %cst_99 = arith.constant 0.899999976 : f32
    %179 = vector.broadcast %cst_99 : f32 to vector<8x1x256xf32>
    %180 = arith.cmpf ogt, %178, %179 : vector<8x1x256xf32>
    %181 = arith.extui %180 : vector<8x1x256xi1> to vector<8x1x256xi32>
    %182 = arith.sitofp %181 : vector<8x1x256xi32> to vector<8x1x256xf32>
    %c0_100 = arith.constant 0 : index
    %c0_101 = arith.constant 0 : index
    %c0_102 = arith.constant 0 : index
    %183 = vector.load %arg1[%c0_100, %c0_101, %c0_102] : memref<8x4x256xf32, #tpu.memory_space<vmem>>, vector<8x4x256xf32>
    %c0_103 = arith.constant 0 : index
    %c0_104 = arith.constant 0 : index
    %c0_105 = arith.constant 0 : index
    %184 = vector.load %arg2[%c0_103, %c0_104, %c0_105] : memref<8x4x256xf32, #tpu.memory_space<vmem>>, vector<8x4x256xf32>
    %185 = arith.subf %183, %184 : vector<8x4x256xf32>
    %186 = arith.mulf %185, %185 : vector<8x4x256xf32>
    %187 = vector.broadcast %182 : vector<8x1x256xf32> to vector<8x4x256xf32>
    %188 = arith.mulf %187, %186 : vector<8x4x256xf32>
    %189 = vector.shape_cast %188 : vector<8x4x256xf32> to vector<1x8x4x256xf32>
    %cst_106 = arith.constant dense<0.000000e+00> : vector<1xf32>
    %190 = vector.multi_reduction <add>, %189, %cst_106 [1, 2, 3] : vector<1x8x4x256xf32> to vector<1xf32>
    %191 = vector.shape_cast %190 : vector<1xf32> to vector<1x1x1x1xf32>
    %192 = vector.extract %191[0, 0, 0, 0] : f32 from vector<1x1x1x1xf32>
    %193 = tpu.iota {dimensions = array<i32: 0>} : vector<8x128xi32>
    %194 = tpu.iota {dimensions = array<i32: 1>} : vector<8x128xi32>
    %c0_i32 = arith.constant 0 : i32
    %195 = vector.broadcast %c0_i32 : i32 to vector<8x128xi32>
    %196 = arith.cmpi eq, %193, %195 : vector<8x128xi32>
    %c0_i32_107 = arith.constant 0 : i32
    %197 = vector.broadcast %c0_i32_107 : i32 to vector<8x128xi32>
    %198 = arith.cmpi eq, %194, %197 : vector<8x128xi32>
    %199 = arith.andi %196, %198 : vector<8x128xi1>
    %cst_108 = arith.constant 0.000000e+00 : f32
    %200 = vector.broadcast %166 : f32 to vector<8x128xf32>
    %201 = vector.broadcast %cst_108 : f32 to vector<8x128xf32>
    %202 = arith.select %199, %200, %201 : vector<8x128xi1>, vector<8x128xf32>
    %c1_i32 = arith.constant 1 : i32
    %203 = vector.broadcast %c1_i32 : i32 to vector<8x128xi32>
    %204 = arith.cmpi eq, %194, %203 : vector<8x128xi32>
    %205 = arith.andi %196, %204 : vector<8x128xi1>
    %cst_109 = arith.constant 0.000000e+00 : f32
    %206 = vector.broadcast %175 : f32 to vector<8x128xf32>
    %207 = vector.broadcast %cst_109 : f32 to vector<8x128xf32>
    %208 = arith.select %205, %206, %207 : vector<8x128xi1>, vector<8x128xf32>
    %209 = arith.addf %202, %208 : vector<8x128xf32>
    %c2_i32 = arith.constant 2 : i32
    %210 = vector.broadcast %c2_i32 : i32 to vector<8x128xi32>
    %211 = arith.cmpi eq, %194, %210 : vector<8x128xi32>
    %212 = arith.andi %196, %211 : vector<8x128xi1>
    %cst_110 = arith.constant 0.000000e+00 : f32
    %213 = vector.broadcast %192 : f32 to vector<8x128xf32>
    %214 = vector.broadcast %cst_110 : f32 to vector<8x128xf32>
    %215 = arith.select %212, %213, %214 : vector<8x128xi1>, vector<8x128xf32>
    %216 = arith.addf %209, %215 : vector<8x128xf32>
    %c3_i32 = arith.constant 3 : i32
    %217 = vector.broadcast %c3_i32 : i32 to vector<8x128xi32>
    %218 = arith.cmpi eq, %194, %217 : vector<8x128xi32>
    %219 = arith.andi %196, %218 : vector<8x128xi1>
    %cst_111 = arith.constant 0.000000e+00 : f32
    %220 = vector.broadcast %171 : f32 to vector<8x128xf32>
    %221 = vector.broadcast %cst_111 : f32 to vector<8x128xf32>
    %222 = arith.select %219, %220, %221 : vector<8x128xi1>, vector<8x128xf32>
    %223 = arith.addf %216, %222 : vector<8x128xf32>
    %c0_112 = arith.constant 0 : index
    %c0_113 = arith.constant 0 : index
    %c0_114 = arith.constant 0 : index
    %224 = vector.load %arg8[%c0_112, %c0_113, %c0_114] : memref<1x8x128xf32, #tpu.memory_space<vmem>>, vector<1x8x128xf32>
    %225 = vector.shape_cast %224 : vector<1x8x128xf32> to vector<8x128xf32>
    %226 = vector.shape_cast %223 : vector<8x128xf32> to vector<1x8x128xf32>
    tpu.vector_store %arg8[%c0_112, %c0_113, %c0_114], %226 {strides = array<i32>} : memref<1x8x128xf32, #tpu.memory_space<vmem>>, vector<1x8x128xf32>,
    return
  }
  func.func @transform_0(%arg0: i32) -> (i32, i32, i32) {
    %c0_i32 = arith.constant 0 : i32
    %c0_i32_0 = arith.constant 0 : i32
    %c0_i32_1 = arith.constant 0 : i32
    return %arg0, %c0_i32, %c0_i32_0 : i32, i32, i32
  }
  func.func @transform_1(%arg0: i32) -> (i32, i32, i32) {
    %c0_i32 = arith.constant 0 : i32
    %c0_i32_0 = arith.constant 0 : i32
    %c0_i32_1 = arith.constant 0 : i32
    return %arg0, %c0_i32, %c0_i32_0 : i32, i32, i32
  }
  func.func @transform_2(%arg0: i32) -> (i32, i32, i32) {
    %c0_i32 = arith.constant 0 : i32
    %c0_i32_0 = arith.constant 0 : i32
    %c0_i32_1 = arith.constant 0 : i32
    return %arg0, %c0_i32, %c0_i32_0 : i32, i32, i32
  }
  func.func @transform_3(%arg0: i32) -> (i32, i32, i32) {
    %c0_i32 = arith.constant 0 : i32
    %c0_i32_0 = arith.constant 0 : i32
    %c0_i32_1 = arith.constant 0 : i32
    return %c0_i32, %arg0, %c0_i32_0 : i32, i32, i32
  }
  func.func @transform_4(%arg0: i32) -> (i32, i32, i32) {
    %c0_i32 = arith.constant 0 : i32
    %c0_i32_0 = arith.constant 0 : i32
    %c0_i32_1 = arith.constant 0 : i32
    return %c0_i32, %arg0, %c0_i32_0 : i32, i32, i32
  }
  func.func @transform_5(%arg0: i32) -> (i32, i32, i32, i32) {
    %c0_i32 = arith.constant 0 : i32
    %c0_i32_0 = arith.constant 0 : i32
    %c0_i32_1 = arith.constant 0 : i32
    %c0_i32_2 = arith.constant 0 : i32
    return %c0_i32, %c0_i32_0, %arg0, %c0_i32_1 : i32, i32, i32, i32
  }
  func.func @transform_6(%arg0: i32) -> (i32, i32, i32, i32) {
    %c0_i32 = arith.constant 0 : i32
    %c0_i32_0 = arith.constant 0 : i32
    %c0_i32_1 = arith.constant 0 : i32
    %c0_i32_2 = arith.constant 0 : i32
    return %c0_i32, %c0_i32_0, %arg0, %c0_i32_1 : i32, i32, i32, i32
  }
  func.func @transform_7(%arg0: i32) -> (i32, i32, i32) {
    %c0_i32 = arith.constant 0 : i32
    %c0_i32_0 = arith.constant 0 : i32
    %c0_i32_1 = arith.constant 0 : i32
    return %arg0, %c0_i32, %c0_i32_0 : i32, i32, i32
  }
}

</mosaic_0001>

<bundles_post_ra>
// kernel: yolov1_loss_pallas.1
= control target key start
LH: loop header
LB: loop body
LE: loop exit
PB: predicated region body
PF: predicated region fallthrough
CT: control target
= control target key end

     0   :  { %s1505_s24 = smov 0   ;;  %s1507_s25 = smov 0   ;;  %s2078_s0 = inlined_call_operand.vmem [shape: f32[16,4,256], index: 0, kind: input, shape index: {}]   ;;  %s2079_s1 = inlined_call_operand.vmem [shape: f32[16,4,256], index: 1, kind: input, shape index: {}]   ;;  %s2080_s2 = inlined_call_operand.vmem [shape: f32[16,2,256], index: 2, kind: input, shape index: {}]   ;;  %s2081_s3 = inlined_call_operand.vmem [shape: f32[2,16,256], index: 3, kind: input, shape index: {}]   ;;  %s2082_s4 = inlined_call_operand.vmem [shape: f32[2,16,256], index: 4, kind: input, shape index: {}]   ;;  %s2083_s5 = inlined_call_operand.vmem [shape: f32[2,4,16,256], index: 5, kind: input, shape index: {}]   ;;  %s2084_s6 = inlined_call_operand.vmem [shape: f32[2,4,16,256], index: 6, kind: input, shape index: {}]   ;;  %s2085_s7 = inlined_call_operand.vmem [shape: f32[2,8,128], index: 7, kind: output, shape index: {}]  }
   0x1   :  { %s1509_s26 = smov 0  }
   0x2 LB: > { %s1521_s27 = sadd.s32 4294967295, %s1462_s26   ;;  %s1524_s28 = sadd.s32 1, %s1462_s26   ;;  %s1462_s26 = sphi %s1509_s26, %s2149_s26   ;;  %s1458_s25 = sphi %s1507_s25, %s2148_s25   ;;  %s1454_s24 = sphi %s1505_s24, %s2147_s24  }
   0x3   : > { %s99_s29 = ssub.s32 %s1462_s26, %s1524_s28  ;;  %s102_s30 = sadd.s32 1, %s1458_s25 }
   0x4   : > { %p100_p0 = scmp.eq.s32.totalorder %s99_s29, 0  ;;  %p109_p1 = scmp.ne.s32.totalorder %s1458_s25, %s1454_s24 }
   0x5   : > { %p110_p2 = scmp.eq.s32.totalorder %s1462_s26, 0  ;;  %p1305_p4 = scmp.ge.s32.totalorder %s1462_s26, 2 }
   0x6   : > { %s1533_s8 = scalar_select %p100_p0, %s1458_s25, %s102_s30  }
   0x7   : > { %p1535_p3 = por %p110_p2, %p109_p1  ;;  %239 = sbr.rel (%p1305_p4) target bundleno = 52 (0x34), region = 16 }
   0xe   : > { %272 = sbr.rel (!%p1535_p3) target bundleno = 21 (0x15), region = 32  ;;  %s274_s10 = sand.u32 (%p1535_p3), 1, %s1458_s25  }
   0xf   : > { %s1392_s11 = sshll.u32 (%p1535_p3), %s1462_s26, 4  ;;  %s1306_s12 = sshll.u32 (%p1535_p3), %s274_s10, 5 }
  0x10   : > { %s279_s15 = scalar_lea.vmem (%p1535_p3), %s2081_s3, %s1392_s11  ;;  %s276_s16 = scalar_lea.vmem (%p1535_p3), [#allocation2], %s1306_s12 }
  0x11   : > { %v292_v0 = vld [vmem:[%s279_s15] sm:$0xff] (%p1535_p3)  ;;  %v294_v1 = vld [vmem:[%s279_s15 + $0x8] sm:$0xff] (%p1535_p3) }
  0x12   : > { %v296_v2 = vld [vmem:[%s279_s15 + $0x20] sm:$0xff] (%p1535_p3)  ;;  %293 = vst [vmem:[%s276_s16] sm:$0xff] (%p1535_p3), %v292_v0  ;;  %295 = vst [vmem:[%s276_s16 + $0x8] sm:$0xff] (%p1535_p3), %v294_v1  ;;  %v298_v3 = vld [vmem:[%s279_s15 + $0x28] sm:$0xff] (%p1535_p3) }
  0x13   : > { %297 = vst [vmem:[%s276_s16 + $0x10] sm:$0xff] (%p1535_p3), %v296_v2  ;;  %299 = vst [vmem:[%s276_s16 + $0x18] sm:$0xff] (%p1535_p3), %v298_v3 }
  0x15 PF: > { %305 = sbr.rel (!%p1535_p3) target bundleno = 28 (0x1c), region = 55  ;;  %s307_s17 = sand.u32 (%p1535_p3), 1, %s1458_s25  }
  0x16   : > { %s1393_s18 = sshll.u32 (%p1535_p3), %s1462_s26, 4  ;;  %s1309_s19 = sshll.u32 (%p1535_p3), %s307_s17, 5 }
  0x17   : > { %s312_s22 = scalar_lea.vmem (%p1535_p3), %s2082_s4, %s1393_s18  ;;  %s309_s23 = scalar_lea.vmem (%p1535_p3), [#allocation3], %s1309_s19 }
  0x18   : > { %v325_v4 = vld [vmem:[%s312_s22] sm:$0xff] (%p1535_p3)  ;;  %v327_v5 = vld [vmem:[%s312_s22 + $0x8] sm:$0xff] (%p1535_p3) }
  0x19   : > { %v329_v6 = vld [vmem:[%s312_s22 + $0x20] sm:$0xff] (%p1535_p3)  ;;  %326 = vst [vmem:[%s309_s23] sm:$0xff] (%p1535_p3), %v325_v4  ;;  %328 = vst [vmem:[%s309_s23 + $0x8] sm:$0xff] (%p1535_p3), %v327_v5  ;;  %v331_v7 = vld [vmem:[%s312_s22 + $0x28] sm:$0xff] (%p1535_p3) }
  0x1a   : > { %330 = vst [vmem:[%s309_s23 + $0x10] sm:$0xff] (%p1535_p3), %v329_v6  ;;  %332 = vst [vmem:[%s309_s23 + $0x18] sm:$0xff] (%p1535_p3), %v331_v7 }
  0x1c PF: > { %338 = sbr.rel (!%p1535_p3) target bundleno = 40 (0x28), region = 78  ;;  %s340_s29 = sand.u32 (%p1535_p3), 1, %s1458_s25  }
  0x1d   : > { %s1394_s30 = sshll.u32 (%p1535_p3), %s1462_s26, 4  ;;  %s1312_s10 = sshll.u32 (%p1535_p3), %s340_s29, 7 }
  0x1e   : > { %s1561_s13 = scalar_lea.vmem (%p1535_p3), %s2083_s5, %s1394_s30  ;;  %s342_s14 = scalar_lea.vmem (%p1535_p3), [#allocation4], %s1312_s10 }
  0x1f   : > { %v358_v8 = vld [vmem:[%s1561_s13] sm:$0xff] (%p1535_p3)  ;;  %v360_v9 = vld [vmem:[%s1561_s13 + $0x8] sm:$0xff] (%p1535_p3) }
  0x20   : > { %v362_v10 = vld [vmem:[%s1561_s13 + $0x20] sm:$0xff] (%p1535_p3)  ;;  %359 = vst [vmem:[%s342_s14] sm:$0xff] (%p1535_p3), %v358_v8  ;;  %361 = vst [vmem:[%s342_s14 + $0x8] sm:$0xff] (%p1535_p3), %v360_v9  ;;  %v364_v11 = vld [vmem:[%s1561_s13 + $0x28] sm:$0xff] (%p1535_p3) }
  0x21   : > { %363 = vst [vmem:[%s342_s14 + $0x10] sm:$0xff] (%p1535_p3), %v362_v10  ;;  %v366_v12 = vld [vmem:[%s1561_s13 + $0x40] sm:$0xff] (%p1535_p3)  ;;  %v368_v13 = vld [vmem:[%s1561_s13 + $0x48] sm:$0xff] (%p1535_p3)  ;;  %365 = vst [vmem:[%s342_s14 + $0x18] sm:$0xff] (%p1535_p3), %v364_v11 }
  0x22   : > { %367 = vst [vmem:[%s342_s14 + $0x20] sm:$0xff] (%p1535_p3), %v366_v12  ;;  %369 = vst [vmem:[%s342_s14 + $0x28] sm:$0xff] (%p1535_p3), %v368_v13  ;;  %v370_v14 = vld [vmem:[%s1561_s13 + $0x60] sm:$0xff] (%p1535_p3)  ;;  %v372_v15 = vld [vmem:[%s1561_s13 + $0x68] sm:$0xff] (%p1535_p3) }
  0x23   : > { %v374_v16 = vld [vmem:[%s1561_s13 + $0x80] sm:$0xff]  ;;  %371 = vst [vmem:[%s342_s14 + $0x30] sm:$0xff] %v370_v14  ;;  %373 = vst [vmem:[%s342_s14 + $0x38] sm:$0xff] %v372_v15  ;;  %v376_v17 = vld [vmem:[%s1561_s13 + $0x88] sm:$0xff] }
  0x24   : > { %375 = vst [vmem:[%s342_s14 + $0x40] sm:$0xff] %v374_v16  ;;  %v378_v18 = vld [vmem:[%s1561_s13 + $0xa0] sm:$0xff]  ;;  %v380_v19 = vld [vmem:[%s1561_s13 + $0xa8] sm:$0xff]  ;;  %377 = vst [vmem:[%s342_s14 + $0x48] sm:$0xff] %v376_v17 }
  0x25   : > { %379 = vst [vmem:[%s342_s14 + $0x50] sm:$0xff] %v378_v18  ;;  %381 = vst [vmem:[%s342_s14 + $0x58] sm:$0xff] %v380_v19  ;;  %v382_v20 = vld [vmem:[%s1561_s13 + $0xc0] sm:$0xff]  ;;  %v384_v21 = vld [vmem:[%s1561_s13 + $0xc8] sm:$0xff] }
  0x26   : > { %v386_v22 = vld [vmem:[%s1561_s13 + $0xe0] sm:$0xff]  ;;  %383 = vst [vmem:[%s342_s14 + $0x60] sm:$0xff] %v382_v20  ;;  %385 = vst [vmem:[%s342_s14 + $0x68] sm:$0xff] %v384_v21  ;;  %v388_v23 = vld [vmem:[%s1561_s13 + $0xe8] sm:$0xff] }
  0x27   : > { %387 = vst [vmem:[%s342_s14 + $0x70] sm:$0xff] %v386_v22  ;;  %389 = vst [vmem:[%s342_s14 + $0x78] sm:$0xff] %v388_v23 }
  0x28 PF: > { %395 = sbr.rel (!%p1535_p3) target bundleno = 52 (0x34), region = 101  ;;  %s397_s15 = sand.u32 (%p1535_p3), 1, %s1458_s25  }
  0x29   : > { %s1395_s16 = sshll.u32 (%p1535_p3), %s1462_s26, 4  ;;  %s1315_s17 = sshll.u32 (%p1535_p3), %s397_s15, 7 }
  0x2a   : > { %s1586_s20 = scalar_lea.vmem (%p1535_p3), %s2084_s6, %s1395_s16  ;;  %s399_s9 = scalar_lea.vmem (%p1535_p3), [#allocation5], %s1315_s17 }
  0x2b   : > { %v415_v24 = vld [vmem:[%s1586_s20] sm:$0xff] (%p1535_p3)  ;;  %v417_v25 = vld [vmem:[%s1586_s20 + $0x8] sm:$0xff] (%p1535_p3) }
  0x2c   : > { %v419_v26 = vld [vmem:[%s1586_s20 + $0x20] sm:$0xff] (%p1535_p3)  ;;  %416 = vst [vmem:[%s399_s9] sm:$0xff] (%p1535_p3), %v415_v24  ;;  %418 = vst [vmem:[%s399_s9 + $0x8] sm:$0xff] (%p1535_p3), %v417_v25  ;;  %v421_v27 = vld [vmem:[%s1586_s20 + $0x28] sm:$0xff] (%p1535_p3) }
  0x2d   : > { %420 = vst [vmem:[%s399_s9 + $0x10] sm:$0xff] (%p1535_p3), %v419_v26  ;;  %v423_v28 = vld [vmem:[%s1586_s20 + $0x40] sm:$0xff] (%p1535_p3)  ;;  %v425_v29 = vld [vmem:[%s1586_s20 + $0x48] sm:$0xff] (%p1535_p3)  ;;  %422 = vst [vmem:[%s399_s9 + $0x18] sm:$0xff] (%p1535_p3), %v421_v27 }
  0x2e   : > { %424 = vst [vmem:[%s399_s9 + $0x20] sm:$0xff] (%p1535_p3), %v423_v28  ;;  %426 = vst [vmem:[%s399_s9 + $0x28] sm:$0xff] (%p1535_p3), %v425_v29  ;;  %v427_v30 = vld [vmem:[%s1586_s20 + $0x60] sm:$0xff] (%p1535_p3)  ;;  %v429_v31 = vld [vmem:[%s1586_s20 + $0x68] sm:$0xff] (%p1535_p3) }
  0x2f   : > { %v431_v32 = vld [vmem:[%s1586_s20 + $0x80] sm:$0xff]  ;;  %428 = vst [vmem:[%s399_s9 + $0x30] sm:$0xff] %v427_v30  ;;  %430 = vst [vmem:[%s399_s9 + $0x38] sm:$0xff] %v429_v31  ;;  %v433_v33 = vld [vmem:[%s1586_s20 + $0x88] sm:$0xff] }
  0x30   : > { %432 = vst [vmem:[%s399_s9 + $0x40] sm:$0xff] %v431_v32  ;;  %v435_v34 = vld [vmem:[%s1586_s20 + $0xa0] sm:$0xff]  ;;  %v437_v35 = vld [vmem:[%s1586_s20 + $0xa8] sm:$0xff]  ;;  %434 = vst [vmem:[%s399_s9 + $0x48] sm:$0xff] %v433_v33 }
  0x31   : > { %436 = vst [vmem:[%s399_s9 + $0x50] sm:$0xff] %v435_v34  ;;  %438 = vst [vmem:[%s399_s9 + $0x58] sm:$0xff] %v437_v35  ;;  %v439_v36 = vld [vmem:[%s1586_s20 + $0xc0] sm:$0xff]  ;;  %v441_v37 = vld [vmem:[%s1586_s20 + $0xc8] sm:$0xff] }
  0x32   : > { %v443_v38 = vld [vmem:[%s1586_s20 + $0xe0] sm:$0xff]  ;;  %440 = vst [vmem:[%s399_s9 + $0x60] sm:$0xff] %v439_v36  ;;  %442 = vst [vmem:[%s399_s9 + $0x68] sm:$0xff] %v441_v37  ;;  %v445_v39 = vld [vmem:[%s1586_s20 + $0xe8] sm:$0xff] }
  0x33   : > { %444 = vst [vmem:[%s399_s9 + $0x70] sm:$0xff] %v443_v38  ;;  %446 = vst [vmem:[%s399_s9 + $0x78] sm:$0xff] %v445_v39 }
  0x34 PF: > { %p1318_p5 = scmp.ge.s32.totalorder %s1462_s26, 1  ;;  %p451_p6 = scmp.lt.s32.totalorder %s1462_s26, 3 }
  0x36   : > { %p452_p7 = pnand %p1318_p5, %p451_p6 }
  0x38   : > { %455 = sbr.rel (%p452_p7) target bundleno = 369 (0x171), region = 124 }
  0x3f   : > { %s458_s21 = sand.u32 1, %s1454_s24   ;;  %v2086_v43 = vlaneseq  ;;  %s1323_s10 = sshll.u32 %s1521_s27, 3  ;;  %vm1087_vm14 = vcmask 1043456  }
  0x40   : > { %s1319_s22 = sshll.u32 %s458_s21, 5  ;;  %s1607_s23 = sshll.u32 %s458_s21, 7 }
  0x41   : > { %s467_s29 = scalar_lea.vmem [#allocation3], %s1319_s22  ;;  %s460_s30 = scalar_lea.vmem [#allocation2], %s1319_s22  ;;  %v1645_v59 = vshrl.u32 %v2086_v43, 7 }
  0x42   : > { %v564_v40 = vld [vmem:[%s467_s29] sm:$0xff]  ;;  %v1609_v41 = vld [vmem:[%s467_s29 + $0x8] sm:$0xff]  ;;  %v1345_v46 = vld [vmem:[%s467_s29 + $0x10] sm:$0xff]  ;;  %s1629_s24 = scalar_lea.vmem [#allocation5], %s1607_s23  ;;  %s1664_s26 = scalar_lea.vmem [#allocation4], %s1607_s23 }
  0x43   : > { %v1611_v42 = vld [vmem:[%s460_s30] sm:$0xff]  ;;  %v1613_v44 = vld [vmem:[%s460_s30 + $0x8] sm:$0xff]  ;;  %v1616_v47 = vld [vmem:[%s467_s29 + $0x18] sm:$0xff]  ;;  %vm570_vm0 = vcmp.lt.f32.partialorder %v564_v40, 1.0  ;;  %vm571_vm1 = vcmp.lt.f32.partialorder %v1609_v41, 1.0  ;;  %vm692_vm2 = vcmp.lt.f32.partialorder %v1345_v46, 1.0  ;;  %v1671_v8 = vadd.f32 %v1345_v46, %v564_v40 }
  0x44   : > { %v568_v45 = vsub.f32 %v1611_v42, %v564_v40  ;;  %v569_v48 = vsub.f32 %v1613_v44, %v1609_v41  ;;  %v1620_v49 = vld [vmem:[%s460_s30 + $0x10] sm:$0xff]  ;;  %v1622_v50 = vld [vmem:[%s460_s30 + $0x18] sm:$0xff]  ;;  %v1632_v54 = vld [vmem:[%s1629_s24] sm:$0xff]  ;;  %vm693_vm3 = vcmp.lt.f32.partialorder %v1616_v47, 1.0  ;;  %2107 = vst [vmem:[#allocation6_spill] sm:$0xff] %v1645_v59  ;;  %p1750_p8 = scmp.lt.s32.totalorder %s1323_s10, 15 }
  0x45   : > { %v690_v52 = vsub.f32 %v1620_v49, %v1345_v46  ;;  %v691_v53 = vsub.f32 %v1622_v50, %v1616_v47  ;;  %v1636_v56 = vld [vmem:[%s1629_s24 + $0x20] sm:$0xff]  ;;  %v1639_v57 = vld [vmem:[%s1629_s24 + $0x28] sm:$0xff]  ;;  %v1642_v58 = vld [vmem:[%s1629_s24 + $0x30] sm:$0xff]  ;;  %vm820_vm4 = vcmp.gt.f32.partialorder %v1671_v8, 0.9  ;;  %p560_p9 = scmp.lt.s32.totalorder %s1521_s27, 1 }
  0x46   : > { %v572_v51 = vmul.f32 %v568_v45, %v568_v45  ;;  %v573_v55 = vmul.f32 %v569_v48, %v569_v48  ;;  %v1649_v63 = vld [vmem:[%s1629_s24 + $0x8] sm:$0xff]  ;;  %v1652_v0 = vld [vmem:[%s1629_s24 + $0x10] sm:$0xff]  ;;  %v1655_v1 = vld [vmem:[%s1629_s24 + $0x38] sm:$0xff]  ;;  %v620_v2 = vmul.f32 0.5, %v1636_v56  ;;  %v621_v6 = vmul.f32 0.5, %v1639_v57  ;;  %s2151_s10 = smov (!%p1750_p8, %s1323_s10), 15 }
  0x47   : > { %v694_v61 = vmul.f32 %v690_v52, %v690_v52  ;;  %v695_v62 = vmul.f32 %v691_v53, %v691_v53  ;;  %v1661_v4 = vld [vmem:[%s1629_s24 + $0x18] sm:$0xff]  ;;  %v1667_v5 = vld [vmem:[%s1664_s26 + $0x20] sm:$0xff]  ;;  %v624_v7 = vmul.f32 0.5, %v1642_v58  ;;  %v1677_v11 = vld [vmem:[%s1664_s26 + $0x28] sm:$0xff]  ;;  %v625_v14 = vmul.f32 0.5, %v1655_v1  ;;  %s1398_s12 = sshll.u32 %s2151_s10, 2 }
  0x48   : > { %v574_v60 = vsel %vm570_vm0, %v572_v51, 0.0  ;;  %v575_v3 = vsel %vm571_vm1, %v573_v55, 0.0  ;;  %v1680_v12 = vld [vmem:[%s1664_s26 + $0x30] sm:$0xff]  ;;  %v622_v13 = vsub.f32 %v1632_v54, %v620_v2  ;;  %v1685_v17 = vld [vmem:[%s1664_s26] sm:$0xff]  ;;  %v1688_v18 = vld [vmem:[%s1664_s26 + $0x8] sm:$0xff]  ;;  %v623_v20 = vsub.f32 %v1649_v63, %v621_v6  ;;  %s1823_s15 = scalar_lea.vmem %s2080_s2, %s1398_s12  ;;  %s1396_s16 = sshll.u32 %s2151_s10, 3 }
  0x49   : > { %v696_v9 = vsel %vm692_vm2, %v694_v61, 0.0  ;;  %v697_v10 = vsel %vm693_vm3, %v695_v62, 0.0  ;;  %v1691_v19 = vld [vmem:[%s1664_s26 + $0x38] sm:$0xff]  ;;  %v626_v21 = vsub.f32 %v1652_v0, %v624_v7  ;;  %v1696_v22 = vld [vmem:[%s1664_s26 + $0x10] sm:$0xff]  ;;  %v627_v23 = vsub.f32 %v1661_v4, %v625_v14  ;;  %s1849_s19 = scalar_lea.vmem %s2078_s0, %s1396_s16  ;;  %s1857_s21 = scalar_lea.vmem %s2079_s1, %s1396_s16 }
  0x4a   : > { %v818_v15 = vadd.f32 %v696_v9, %v574_v60  ;;  %v819_v16 = vadd.f32 %v697_v10, %v575_v3  ;;  %v628_v24 = vadd.f32 %v1636_v56, %v622_v13  ;;  %v632_v25 = vmul.f32 0.5, %v1667_v5  ;;  %v1703_v28 = vld [vmem:[%s1664_s26 + $0x18] sm:$0xff]  ;;  %v1719_v3 = vld [vmem:[%s1629_s24 + $0x60] sm:$0xff]  ;;  %s2153_s27 = smov (!%p560_p9, %s1521_s27), 1 }
  0x4b   : > { %v633_v26 = vmul.f32 0.5, %v1677_v11  ;;  %v629_v29 = vadd.f32 %v1639_v57, %v623_v20  ;;  %v630_v30 = vadd.f32 %v1642_v58, %v626_v21  ;;  %v636_v31 = vmul.f32 0.5, %v1680_v12  ;;  %2108 = vst [vmem:[#allocation7_spill] sm:$0xff] %v1719_v3  ;;  %v934_v8 = vld [vmem:[%s1849_s19 + $0x38] sm:$0xff] }
  0x4c   : > { %v854_v27 = vadd.f32 %v819_v16, %v818_v15  ;;  %v631_v32 = vadd.f32 %v1655_v1, %v627_v23  ;;  %v634_v33 = vsub.f32 %v1685_v17, %v632_v25  ;;  %v637_v35 = vmul.f32 0.5, %v1691_v19 }
  0x4d   : > { %v635_v34 = vsub.f32 %v1688_v18, %v633_v26  ;;  %v638_v36 = vsub.f32 %v1696_v22, %v636_v31  ;;  %v662_v37 = vsub.f32 %v628_v24, %v622_v13  ;;  %v663_v38 = vsub.f32 %v629_v29, %v623_v20  ;;  %v1729_v26 = vld [vmem:[%s1629_s24 + $0x48] sm:$0xff] }
  0x4e   : > { %855 = vadd.xlane.f32.xlu1 %v854_v27  ;;  %v664_v39 = vsub.f32 %v630_v30, %v626_v21  ;;  %v639_v40 = vsub.f32 %v1703_v28, %v637_v35  ;;  %v640_v45 = vadd.f32 %v1667_v5, %v634_v33  ;;  %v646_v48 = vmax.f32 %v622_v13, %v634_v33  ;;  %v1722_v13 = vld [vmem:[%s1629_s24 + $0x68] sm:$0xff]  ;;  %v1732_v27 = vld [vmem:[%s1629_s24 + $0x70] sm:$0xff] }
  0x4f   : > { %v641_v46 = vadd.f32 %v1677_v11, %v635_v34  ;;  %v642_v51 = vadd.f32 %v1680_v12, %v638_v36  ;;  %v647_v52 = vmax.f32 %v623_v20, %v635_v34  ;;  %v654_v53 = vmax.f32 %v626_v21, %v638_v36  ;;  %2109 = vst [vmem:[#allocation8_spill] sm:$0xff] %v1722_v13  ;;  %v1725_v21 = vld [vmem:[%s1629_s24 + $0x40] sm:$0xff] }
  0x50   : > { %v665_v55 = vsub.f32 %v631_v32, %v627_v23  ;;  %v643_v60 = vadd.f32 %v1691_v19, %v639_v40  ;;  %v644_v61 = vmin.f32 %v628_v24, %v640_v45  ;;  %v655_v2 = vmax.f32 %v627_v23, %v639_v40  ;;  %2110 = vst [vmem:[#allocation9_spill] sm:$0xff] %v1729_v26 }
  0x51   : > { %v645_v62 = vmin.f32 %v629_v29, %v641_v46  ;;  %v652_v6 = vmin.f32 %v630_v30, %v642_v51  ;;  %v666_v7 = vmul.f32 %v664_v39, %v662_v37  ;;  %v668_v10 = vsub.f32 %v640_v45, %v634_v33  ;;  %2111 = vst [vmem:[#allocation10_spill] sm:$0xff] %v1732_v27  ;;  %v1735_v29 = vld [vmem:[%s1629_s24 + $0x78] sm:$0xff] }
  0x52   : > { %v667_v9 = vmul.f32 %v665_v55, %v663_v38  ;;  %v648_v14 = vsub.f32 %v644_v61, %v646_v48  ;;  %v653_v16 = vmin.f32 %v631_v32, %v643_v60  ;;  %v669_v20 = vsub.f32 %v641_v46, %v635_v34  ;;  %2112 = vst [vmem:[#allocation11_spill] sm:$0xff] %v1735_v29  ;;  %v1740_v38 = vld [vmem:[%s1629_s24 + $0x50] sm:$0xff]  ;;  %v1743_v39 = vld [vmem:[%s1629_s24 + $0x58] sm:$0xff]  ;;  %v1755_v46 = vld [vmem:[%s1664_s26 + $0x60] sm:$0xff]  ;;  %s1332_s24 = sshll.u32 %s2153_s27, 3 }
  0x53   : > { %v649_v15 = vsub.f32 %v645_v62, %v647_v52  ;;  %v656_v23 = vsub.f32 %v652_v6, %v654_v53  ;;  %v670_v24 = vsub.f32 %v642_v51, %v638_v36  ;;  %v671_v25 = vsub.f32 %v643_v60, %v639_v40  ;;  %2113 = vst [vmem:[#allocation12_spill] sm:$0xff] %v1740_v38  ;;  %v1758_v48 = vld [vmem:[%s1664_s26 + $0x68] sm:$0xff]  ;;  %v1761_v51 = vld [vmem:[%s1664_s26 + $0x70] sm:$0xff]  ;;  %s563_s11 = scalar_lea.vmem %s2085_s7, %s1332_s24 }
  0x54   : > { %v744_v30 = vmul.f32 0.5, %v1719_v3  ;;  %v650_v31 = vmax.f32 %v648_v14, 0.0  ;;  %v657_v33 = vsub.f32 %v653_v16, %v655_v2  ;;  %v745_v34 = vmul.f32 0.5, %v1722_v13  ;;  %2114 = vst [vmem:[#allocation13_spill] sm:$0xff] %v1743_v39  ;;  %2116 = vst [vmem:[#allocation14_spill] sm:$0xff] %v1755_v46  ;;  %v1771_v2 = vld [vmem:[%s1664_s26 + $0x78] sm:$0xff] }
  0x55   : > { %v651_v32 = vmax.f32 %v649_v15, 0.0  ;;  %v658_v35 = vmax.f32 %v656_v23, 0.0  ;;  %v672_v36 = vmul.f32 %v670_v24, %v668_v10  ;;  %v673_v37 = vmul.f32 %v671_v25, %v669_v20  ;;  %2117 = vst [vmem:[#allocation15_spill] sm:$0xff] %v1758_v48  ;;  %2118 = vst [vmem:[#allocation16_spill] sm:$0xff] %v1761_v51  ;;  %v1778_v14 = vld [vmem:[%s1664_s26 + $0x40] sm:$0xff]  ;;  %v1781_v15 = vld [vmem:[%s1664_s26 + $0x48] sm:$0xff] }
  0x56   : > { %v1746_v40 = vsub.f32 %v1725_v21, %v744_v30  ;;  %v659_v45 = vmax.f32 %v657_v33, 0.0  ;;  %v1764_v52 = vsub.f32 %v1729_v26, %v745_v34  ;;  %v748_v53 = vmul.f32 0.5, %v1732_v27  ;;  %2119 = vst [vmem:[#allocation17_spill] sm:$0xff] %v1771_v2  ;;  %2120 = vst [vmem:[#allocation18_spill] sm:$0xff] %v1778_v14  ;;  %v1784_v16 = vld [vmem:[%s1664_s26 + $0x50] sm:$0xff]  ;;  %v1792_v24 = vld [vmem:[%s1664_s26 + $0x58] sm:$0xff] }
  0x57   : > { %v749_v55 = vmul.f32 0.5, %v1735_v29  ;;  %v1768_v60 = vmul.f32 %v658_v35, %v650_v31  ;;  %v674_v61 = vadd.f32 %v672_v36, %v666_v7  ;;  %v675_v62 = vadd.f32 %v673_v37, %v667_v9  ;;  %2121 = vst [vmem:[#allocation19_spill] sm:$0xff] %v1781_v15  ;;  %2122 = vst [vmem:[#allocation20_spill] sm:$0xff] %v1784_v16 }
  0x58   : > { %v752_v6 = vadd.f32 %v1719_v3, %v1746_v40  ;;  %v1775_v10 = vmul.f32 %v659_v45, %v651_v32  ;;  %v750_v20 = vsub.f32 %v1740_v38, %v748_v53  ;;  %v753_v9 = vadd.f32 %v1722_v13, %v1764_v52  ;;  %2123 = vst [vmem:[#allocation21_spill] sm:$0xff] %v1792_v24  ;;  %v937_v38 = vld [vmem:[%s1857_s21 + $0x10] sm:$0xff] }
  0x59   : > { %v751_v7 = vsub.f32 %v1743_v39, %v749_v55  ;;  %v676_v23 = vsub.f32 %v674_v61, %v1768_v60  ;;  %v756_v25 = vmul.f32 0.5, %v1755_v46  ;;  %v757_v30 = vmul.f32 0.5, %v1758_v48 }
  0x5a   : > { %v760_v31 = vmul.f32 0.5, %v1761_v51  ;;  %v677_v32 = vsub.f32 %v675_v62, %v1775_v10  ;;  %v754_v33 = vadd.f32 %v1732_v27, %v750_v20  ;;  %v761_v35 = vmul.f32 0.5, %v1771_v2 }
  0x5b   : > { %v755_v34 = vadd.f32 %v1735_v29, %v751_v7  ;;  %v678_v36 = vadd.f32 0.0001, %v676_v23  ;;  %v758_v37 = vsub.f32 %v1778_v14, %v756_v25  ;;  %v759_v45 = vsub.f32 %v1781_v15, %v757_v30 }
  0x5c   : > { %v762_v53 = vsub.f32 %v1784_v16, %v760_v31  ;;  %v679_v55 = vadd.f32 0.0001, %v677_v32  ;;  %v763_v61 = vsub.f32 %v1792_v24, %v761_v35  ;;  %v786_v62 = vsub.f32 %v752_v6, %v1746_v40 }
  0x5d   : > { %v787_v43 = vsub.f32 %v753_v9, %v1764_v52  ;;  %1432 = vrcp.f32 %v678_v36  ;;  %v764_v29 = vadd.f32 %v1755_v46, %v758_v37  ;;  %v765_v27 = vadd.f32 %v1758_v48, %v759_v45 }
  0x5e   : > { %v766_v23 = vadd.f32 %v1761_v51, %v762_v53  ;;  %1434 = vrcp.f32 %v679_v55  ;;  %v767_v25 = vadd.f32 %v1771_v2, %v763_v61  ;;  %v770_v30 = vmax.f32 %v1746_v40, %v758_v37 }
  0x5f   : > { %v771_v31 = vmax.f32 %v1764_v52, %v759_v45  ;;  %v768_v32 = vmin.f32 %v752_v6, %v764_v29  ;;  %v769_v35 = vmin.f32 %v753_v9, %v765_v27  ;;  %v778_v3 = vmax.f32 %v750_v20, %v762_v53 }
  0x60   : > { %v776_v13 = vmin.f32 %v754_v33, %v766_v23  ;;  %v777_v24 = vmin.f32 %v755_v34, %v767_v25  ;;  %v779_v36 = vmax.f32 %v751_v7, %v763_v61  ;;  %v788_v39 = vsub.f32 %v754_v33, %v750_v20 }
  0x61   : > { %v789_v46 = vsub.f32 %v755_v34, %v751_v7  ;;  %v772_v16 = vsub.f32 %v768_v32, %v770_v30  ;;  %v773_v48 = vsub.f32 %v769_v35, %v771_v31  ;;  %v792_v55 = vsub.f32 %v764_v29, %v758_v37  ;;  %v1374_v34 = vld [vmem:[%s1823_s15 + $0x1] ss:$2 sm:$0x3]  ;;  %v1378_v32 = vld [vmem:[%s1823_s15 + $0x11] ss:$2 sm:$0x3] }
  0x62   : > { %v780_v51 = vsub.f32 %v776_v13, %v778_v3  ;;  %v781_v40 = vsub.f32 %v777_v24, %v779_v36  ;;  %v790_v52 = vmul.f32 %v788_v39, %v786_v62  ;;  %v793_v6 = vsub.f32 %v765_v27, %v759_v45  ;;  %v864_v39 = vld [vmem:[%s1823_s15] ss:$2 sm:$0x3]  ;;  %v1372_v62 = vld [vmem:[%s1823_s15 + $0x18] ss:$2 sm:$0x3] }
  0x63   : > { %v774_v20 = vmax.f32 %v772_v16, 0.0  ;;  %v775_v7 = vmax.f32 %v773_v48, 0.0  ;;  %v794_v3 = vsub.f32 %v766_v23, %v762_v53  ;;  %v791_v29 = vmul.f32 %v789_v46, %v787_v43  ;;  %v1368_v43 = vld [vmem:[%s1823_s15 + $0x8] ss:$2 sm:$0x3] }
  0x64   : > { %v782_v9 = vmax.f32 %v780_v51, 0.0  ;;  %v783_v13 = vmax.f32 %v781_v40, 0.0  ;;  %v795_v33 = vsub.f32 %v767_v25, %v763_v61  ;;  %v1829_v27 = vsub.s32 0, %v1645_v59  ;;  %v1367_v51 = vld [vmem:[%s1823_s15 + $0x4] ss:$2 sm:$0x3] }
  0x65   : > { %v796_v16 = vmul.f32 %v794_v3, %v792_v55  ;;  %v817_v48 = vadd.f32 %v1616_v47, %v1609_v41  ;;  %v1369_v46 = vld [vmem:[%s1823_s15 + $0xc] ss:$2 sm:$0x3]  ;;  %v1370_v53 = vld [vmem:[%s1823_s15 + $0x10] ss:$2 sm:$0x3] }
  0x66   : > { %v1831_v24 = vmul.f32 %v782_v9, %v774_v20  ;;  %v1839_v37 = vmul.f32 %v783_v13, %v775_v7  ;;  %v797_v45 = vmul.f32 %v795_v33, %v793_v6  ;;  %v1371_v61 = vld [vmem:[%s1823_s15 + $0x14] ss:$2 sm:$0x3]  ;;  %v1375_v23 = vld [vmem:[%s1823_s15 + $0x5] ss:$2 sm:$0x3]  ;;  %v895_v20 = vadd.f32 %v1374_v34, %v864_v39 }
  0x67   : > { %v1376_v25 = vld [vmem:[%s1823_s15 + $0x9] ss:$2 sm:$0x3]  ;;  %v1433_v30 = vpop.eup %1432  ;;  %v798_v31 = vadd.f32 %v796_v16, %v790_v52  ;;  %v1373_v41 = vld [vmem:[%s1823_s15 + $0x1c] ss:$2 sm:$0x3]  ;;  %v1865_v7 = vsub.f32 %v1685_v17, %v1632_v54  ;;  %v896_v3 = vadd.f32 %v1375_v23, %v1367_v51 }
  0x68   : > { %v1377_v47 = vld [vmem:[%s1823_s15 + $0xd] ss:$2 sm:$0x3]  ;;  %v1435_v35 = vpop.eup %1434  ;;  %v799_v36 = vadd.f32 %v797_v45, %v791_v29  ;;  %v1379_v55 = vld [vmem:[%s1823_s15 + $0x15] ss:$2 sm:$0x3]  ;;  %v897_v13 = vadd.f32 %v1376_v25, %v1368_v43  ;;  %v899_v45 = vadd.f32 %v1378_v32, %v1370_v53 }
  0x69   : > { %v1380_v40 = vld [vmem:[%s1823_s15 + $0x19] ss:$2 sm:$0x3]  ;;  %v800_v52 = vsub.f32 %v798_v31, %v1831_v24  ;;  %vm821_vm5 = vcmp.gt.f32.partialorder %v817_v48, 0.9  ;;  %v898_v29 = vadd.f32 %v1377_v47, %v1369_v46  ;;  %v927_v33 = vld [vmem:[%s1849_s19] sm:$0xff]  ;;  %v900_v31 = vadd.f32 %v1379_v55, %v1371_v61 }
  0x6a   : > { %v1381_v6 = vld [vmem:[%s1823_s15 + $0x1d] ss:$2 sm:$0x3]  ;;  %v801_v9 = vsub.f32 %v799_v36, %v1839_v37  ;;  %v901_v2 = vadd.f32 %v1380_v40, %v1372_v62  ;;  %v928_v39 = vld [vmem:[%s1849_s19 + $0x8] sm:$0xff]  ;;  %v929_v34 = vld [vmem:[%s1849_s19 + $0x10] sm:$0xff]  ;;  %v1464_v43 = vmov 0.0   ;;  %v1888_v55 = vmul.f32 %v1433_v30, %v1768_v60 }
  0x6b   : > { %v802_v16 = vadd.f32 0.0001, %v800_v52  ;;  %v935_v54 = vld [vmem:[%s1857_s21] sm:$0xff]  ;;  %v936_v17 = vld [vmem:[%s1857_s21 + $0x8] sm:$0xff]  ;;  %v1876_v46 = vsel %vm820_vm4, 1.0, %v1464_v43  ;;  %v1879_v53 = vsel %vm821_vm5, 1.0, %v1464_v43  ;;  %v902_v61 = vadd.f32 %v1381_v6, %v1373_v41 }
  0x6c   : > { %v803_v51 = vadd.f32 0.0001, %v801_v9  ;;  %v930_v62 = vld [vmem:[%s1849_s19 + $0x18] sm:$0xff]  ;;  %v931_v23 = vld [vmem:[%s1849_s19 + $0x20] sm:$0xff]  ;;  %v932_v25 = vld [vmem:[%s1849_s19 + $0x28] sm:$0xff]  ;;  %2124 = vst [vmem:[#allocation22_spill] sm:$0xff] %v1888_v55  ;;  %v1891_v40 = vmul.f32 %v1435_v35, %v1775_v10  ;;  %v943_v41 = vsub.f32 %v927_v33, %v935_v54  ;;  %v944_v30 = vsub.f32 %v928_v39, %v936_v17 }
  0x6d   : > { %v933_v47 = vld [vmem:[%s1849_s19 + $0x30] sm:$0xff]  ;;  %v938_v32 = vld [vmem:[%s1857_s21 + $0x18] sm:$0xff]  ;;  %v939_v36 = vld [vmem:[%s1857_s21 + $0x20] sm:$0xff]  ;;  %1436 = vrcp.f32 %v802_v16  ;;  %vm903_vm6 = vcmp.gt.f32.partialorder %v895_v20, 0.9  ;;  %v945_v6 = vsub.f32 %v929_v34, %v937_v38  ;;  %v1906_v33 = vsub.s32 1, %v1645_v59 }
  0x6e   : > { %2125 = vst [vmem:[#allocation23_spill] sm:$0xff] %v1891_v40  ;;  %v940_v48 = vld [vmem:[%s1857_s21 + $0x28] sm:$0xff]  ;;  %v941_v52 = vld [vmem:[%s1857_s21 + $0x30] sm:$0xff]  ;;  %v942_v9 = vld [vmem:[%s1857_s21 + $0x38] sm:$0xff]  ;;  %1438 = vrcp.f32 %v803_v51  ;;  %vm904_vm7 = vcmp.gt.f32.partialorder %v896_v3, 0.9  ;;  %v946_v10 = vsub.f32 %v930_v62, %v938_v32  ;;  %v947_v35 = vsub.f32 %v931_v23, %v939_v36 }
  0x6f   : > { %vm905_vm8 = vcmp.gt.f32.partialorder %v897_v13, 0.9  ;;  %vm906_vm9 = vcmp.gt.f32.partialorder %v898_v29, 0.9  ;;  %vm907_vm10 = vcmp.gt.f32.partialorder %v899_v45, 0.9  ;;  %v948_v16 = vsub.f32 %v932_v25, %v940_v48 }
  0x70   : > { %vm908_vm11 = vcmp.gt.f32.partialorder %v900_v31, 0.9  ;;  %vm909_vm12 = vcmp.gt.f32.partialorder %v901_v2, 0.9  ;;  %vm910_vm13 = vcmp.gt.f32.partialorder %v902_v61, 0.9  ;;  %v949_v20 = vsub.f32 %v933_v47, %v941_v52 }
  0x71   : > { %v1382_v60 = vsel %vm903_vm6, 1.0, %v1464_v43  ;;  %v1383_v15 = vsel %vm904_vm7, 1.0, %v1464_v43  ;;  %v1384_v26 = vsel %vm905_vm8, 1.0, %v1464_v43  ;;  %v1897_v14 = vsel %vm906_vm9, 1.0, %v1464_v43 }
  0x72   : > { %v950_v51 = vsub.f32 %v934_v8, %v942_v9  ;;  %v1900_v3 = vsel %vm907_vm10, 1.0, %v1464_v43  ;;  %v1903_v13 = vsel %vm908_vm11, 1.0, %v1464_v43  ;;  %v951_v29 = vmul.f32 %v943_v41, %v943_v41 }
  0x73   : > { %v1909_v38 = vsel %vm909_vm12, 1.0, %v1464_v43  ;;  %v1912_v39 = vsel %vm910_vm13, 1.0, %v1464_v43  ;;  %v952_v34 = vmul.f32 %v944_v30, %v944_v30  ;;  %v953_v54 = vmul.f32 %v945_v6, %v945_v6 }
  0x74   : > { %v954_v17 = vmul.f32 %v946_v10, %v946_v10  ;;  %v955_v62 = vmul.f32 %v947_v35, %v947_v35  ;;  %v956_v45 = vmul.f32 %v948_v16, %v948_v16  ;;  %v1914_v23 = vmul.f32 %v949_v20, %v949_v20 }
  0x75   : > { %v1916_v31 = vmul.f32 %v950_v51, %v950_v51  ;;  %v970_v25 = vrot.slane %v1382_v60, %v1829_v27  ;;  %v978_v47 = vrot.slane %v1383_v15, %v1829_v27  ;;  %v986_v2 = vrot.slane %v1384_v26, %v1829_v27 }
  0x76   : > { %v974_v43 = vrot.slane %v1382_v60, %v1906_v33  ;;  %v994_v61 = vrot.slane %v1897_v14, %v1829_v27  ;;  %v1002_v36 = vrot.slane %v1900_v3, %v1829_v27  ;;  %v1055_v8 = vcombine.high %v951_v29, %v951_v29 }
  0x77   : > { %v1437_v32 = vpop.eup %1436  ;;  %v1010_v9 = vrot.slane %v1903_v13, %v1829_v27  ;;  %v982_v6 = vrot.slane %v1383_v15, %v1906_v33  ;;  %v990_v10 = vrot.slane %v1384_v26, %v1906_v33  ;;  %v1056_v35 = vcombine.high %v952_v34, %v952_v34 }
  0x78   : > { %v1439_v48 = vpop.eup %1438  ;;  %v1927_v52 = vmul.f32 %v1437_v32, %v1831_v24  ;;  %v998_v24 = vrot.slane %v1897_v14, %v1906_v33  ;;  %v1057_v16 = vcombine.high %v953_v54, %v953_v54  ;;  %v1071_v20 = vmul.f32 %v970_v25, %v951_v29 }
  0x79   : > { %v1936_v30 = vmul.f32 %v1439_v48, %v1839_v37  ;;  %v1072_v14 = vmul.f32 %v1055_v8, %v974_v43  ;;  %v1073_v25 = vmul.f32 %v978_v47, %v952_v34  ;;  %v1006_v48 = vrot.slane %v1900_v3, %v1906_v33 }
  0x7a   : > { %vm808_vm15 = vcmp.gt.f32.partialorder %v1927_v52, %v1888_v55  ;;  %v1059_v8 = vcombine.high %v955_v62, %v955_v62  ;;  %v1060_v60 = vcombine.high %v956_v45, %v956_v45  ;;  %v1074_v41 = vmul.f32 %v1056_v35, %v982_v6 }
  0x7b   : > { %vm809_vm0 = vcmp.gt.f32.partialorder %v1936_v30, %v1891_v40  ;;  %v810_v15 = vsel %vm808_vm15, %v1927_v52, %v1888_v55  ;;  %v812_v26 = vsel %vm808_vm15, %v1620_v49, %v1611_v42  ;;  %v1014_v42 = vrot.slane %v1903_v13, %v1906_v33 }
  0x7c   : > { %v811_v37 = vsel %vm809_vm0, %v1936_v30, %v1891_v40  ;;  %v813_v51 = vsel %vm809_vm0, %v1622_v50, %v1613_v44  ;;  %v826_v29 = vsub.f32 %v812_v26, %v810_v15  ;;  %v1058_v49 = vcombine.high %v954_v17, %v954_v17 }
  0x7d   : > { %v827_v32 = vsub.f32 %v813_v51, %v811_v37  ;;  %v1075_v55 = vmul.f32 %v986_v2, %v953_v54  ;;  %v1076_v40 = vmul.f32 %v1057_v16, %v990_v10  ;;  %v1077_v44 = vmul.f32 %v994_v61, %v954_v17 }
  0x7e   : > { %v828_v43 = vmul.f32 %v1876_v46, %v826_v29  ;;  %v1088_v34 = vsel %vm1087_vm14, %v1071_v20, 0.0  ;;  %v1089_v47 = vsel %vm1087_vm14, %v1072_v14, 0.0  ;;  %v1091_v3 = vsel %vm1087_vm14, %v1073_v25, 0.0 }
  0x7f   : > { %v829_v59 = vmul.f32 %v1879_v53, %v827_v32  ;;  %v1022_v13 = vrot.slane %v1909_v38, %v1906_v33  ;;  %v1078_v26 = vmul.f32 %v1058_v49, %v998_v24  ;;  %v1090_v37 = vadd.f32 %v1089_v47, %v1088_v34  ;;  %v2128_v49 = vld [vmem:[#allocation19_spill] sm:$0xff] }
  0x80   : > { %v830_v50 = vmul.f32 %v828_v43, %v826_v29  ;;  %v1030_v6 = vrot.slane %v1912_v39, %v1906_v33  ;;  %v1061_v54 = vcombine.high %v1914_v23, %v1914_v23  ;;  %v1079_v17 = vmul.f32 %v1002_v36, %v955_v62  ;;  %v2129_v43 = vld [vmem:[#allocation12_spill] sm:$0xff]  ;;  %v2133_v47 = vld [vmem:[#allocation7_spill] sm:$0xff] }
  0x81   : > { %v831_v15 = vmul.f32 %v829_v59, %v827_v32  ;;  %v1093_v2 = vsel %vm1087_vm14, %v1074_v41, 0.0  ;;  %v1080_v10 = vmul.f32 %v1059_v8, %v1006_v48  ;;  %v1081_v35 = vmul.f32 %v1010_v9, %v956_v45  ;;  %v2130_v8 = vld [vmem:[#allocation20_spill] sm:$0xff] }
  0x82   : > { %v1092_v16 = vadd.f32 %v1091_v3, %v1090_v37  ;;  %v1082_v20 = vmul.f32 %v1060_v60, %v1014_v42  ;;  %v1095_v59 = vsel %vm1087_vm14, %v1075_v55, 0.0  ;;  %v1097_v14 = vsel %vm1087_vm14, %v1076_v40, 0.0  ;;  %v2127_v42 = vld [vmem:[#allocation9_spill] sm:$0xff]  ;;  %v2134_v3 = vld [vmem:[#allocation14_spill] sm:$0xff] }
  0x83   : > { %v832_v61 = vadd.f32 %v831_v15, %v830_v50  ;;  %v1099_v24 = vsel %vm1087_vm14, %v1077_v44, 0.0  ;;  %v1101_v29 = vsel %vm1087_vm14, %v1078_v26, 0.0  ;;  %v599_v62 = vsub.f32 %v1688_v18, %v1649_v63  ;;  %v2132_v50 = vld [vmem:[#allocation21_spill] sm:$0xff] }
  0x84   : > { %v1094_v51 = vadd.f32 %v1093_v2, %v1092_v16  ;;  %v600_v36 = vsub.f32 %v1696_v22, %v1652_v0  ;;  %v1103_v45 = vsel %vm1087_vm14, %v1079_v17, 0.0  ;;  %v601_v9 = vsub.f32 %v1703_v28, %v1661_v4  ;;  %v2137_v17 = vld [vmem:[#allocation10_spill] sm:$0xff]  ;;  %v2138_v2 = vld [vmem:[#allocation16_spill] sm:$0xff]  ;;  %v2140_v16 = vld [vmem:[#allocation17_spill] sm:$0xff] }
  0x85   : > { %833 = vadd.xlane.f32.xlu0 %v832_v61  ;;  %v602_v55 = vsub.f32 %v1667_v5, %v1636_v56  ;;  %v603_v40 = vsub.f32 %v1677_v11, %v1639_v57  ;;  %v1105_v60 = vsel %vm1087_vm14, %v1080_v10, 0.0  ;;  %v606_v63 = vmul.f32 %v1865_v7, %v1865_v7  ;;  %v2126_v57 = vld [vmem:[#allocation18_spill] sm:$0xff]  ;;  %v2139_v10 = vld [vmem:[#allocation11_spill] sm:$0xff] }
  0x86   : > { %v1096_v41 = vadd.f32 %v1095_v59, %v1094_v51  ;;  %v607_v18 = vmul.f32 %v599_v62, %v599_v62  ;;  %v604_v0 = vsub.f32 %v1680_v12, %v1642_v58  ;;  %v608_v22 = vmul.f32 %v600_v36, %v600_v36  ;;  %v2131_v12 = vld [vmem:[#allocation13_spill] sm:$0xff] }
  0x87   : > { %v609_v25 = vmul.f32 %v601_v9, %v601_v9  ;;  %v612_v32 = vmul.f32 %v602_v55, %v602_v55  ;;  %v605_v56 = vsub.f32 %v1691_v19, %v1655_v1  ;;  %v613_v5 = vmul.f32 %v603_v40, %v603_v40  ;;  %v2135_v1 = vld [vmem:[#allocation8_spill] sm:$0xff]  ;;  %v2136_v19 = vld [vmem:[#allocation15_spill] sm:$0xff] }
  0x88   : > { %v1098_v4 = vadd.f32 %v1097_v14, %v1096_v41  ;;  %v722_v11 = vsub.f32 %v2126_v57, %v1725_v21  ;;  %v610_v28 = vadd.f32 %v608_v22, %v606_v63  ;;  %v723_v7 = vsub.f32 %v2128_v49, %v2127_v42 }
  0x89   : > { %v611_v48 = vadd.f32 %v609_v25, %v607_v18  ;;  %v724_v44 = vsub.f32 %v2130_v8, %v2129_v43  ;;  %v725_v34 = vsub.f32 %v2132_v50, %v2131_v12  ;;  %v726_v15 = vsub.f32 %v2134_v3, %v2133_v47 }
  0x8a   : > { %v1100_v58 = vadd.f32 %v1099_v24, %v1098_v4  ;;  %v727_v26 = vsub.f32 %v2136_v19, %v2135_v1  ;;  %v614_v37 = vadd.f32 %v612_v32, %v610_v28  ;;  %v616_v21 = vmul.f32 %v604_v0, %v604_v0 }
  0x8b   : > { %v728_v61 = vsub.f32 %v2138_v2, %v2137_v17  ;;  %v729_v59 = vsub.f32 %v2140_v16, %v2139_v10  ;;  %v730_v51 = vmul.f32 %v722_v11, %v722_v11  ;;  %v731_v24 = vmul.f32 %v723_v7, %v723_v7 }
  0x8c   : > { %v1102_v14 = vadd.f32 %v1101_v29, %v1100_v58  ;;  %v732_v62 = vmul.f32 %v724_v44, %v724_v44  ;;  %v615_v36 = vadd.f32 %v613_v5, %v611_v48  ;;  %v617_v9 = vmul.f32 %v605_v56, %v605_v56 }
  0x8d   : > { %v733_v55 = vmul.f32 %v725_v34, %v725_v34  ;;  %v736_v40 = vmul.f32 %v726_v15, %v726_v15  ;;  %v737_v18 = vmul.f32 %v727_v26, %v727_v26  ;;  %v740_v22 = vmul.f32 %v728_v61, %v728_v61 }
  0x8e   : > { %v1104_v41 = vadd.f32 %v1103_v45, %v1102_v14  ;;  %v734_v63 = vadd.f32 %v732_v62, %v730_v51  ;;  %v2141_v0 = vrot.slane %v1909_v38, %v1829_v27  ;;  %v1107_v32 = vsel %vm1087_vm14, %v1081_v35, 0.0 }
  0x8f   : > { %v735_v4 = vadd.f32 %v733_v55, %v731_v24  ;;  %v741_v29 = vmul.f32 %v729_v59, %v729_v59  ;;  %v1062_v57 = vcombine.high %v1916_v31, %v1916_v31  ;;  %v618_v56 = vadd.f32 %v616_v21, %v614_v37 }
  0x90   : > { %v1083_v25 = vmul.f32 %v2141_v0, %v1914_v23  ;;  %v1106_v5 = vadd.f32 %v1105_v60, %v1104_v41  ;;  %v738_v11 = vadd.f32 %v736_v40, %v734_v63  ;;  %v1084_v45 = vmul.f32 %v1061_v54, %v1022_v13 }
  0x91   : > { %v1109_v28 = vsel %vm1087_vm14, %v1082_v20, 0.0  ;;  %v619_v48 = vadd.f32 %v617_v9, %v615_v36  ;;  %v739_v42 = vadd.f32 %v737_v18, %v735_v4  ;;  %v2142_v7 = vrot.slane %v1912_v39, %v1829_v27 }
  0x92   : > { %v1108_v35 = vadd.f32 %v1107_v32, %v1106_v5  ;;  %v742_v49 = vadd.f32 %v740_v22, %v738_v11  ;;  %v1111_v43 = vsel %vm1087_vm14, %v1083_v25, 0.0  ;;  %v1086_v13 = vmul.f32 %v1062_v57, %v1030_v6  ;;  %v2146_v25 = vld [vmem:[#allocation6_spill] sm:$0xff] }
  0x93   : > { %v1085_v60 = vmul.f32 %v2142_v7, %v1916_v31  ;;  %v743_v8 = vadd.f32 %v741_v29, %v739_v42  ;;  %v1113_v54 = vsel %vm1087_vm14, %v1084_v45, 0.0  ;;  %v2145_v22 = vlaneseq }
  0x94   : > { %v1110_v44 = vadd.f32 %v1109_v28, %v1108_v35  ;;  %v814_v23 = vsel %vm808_vm15, %v742_v49, %v618_v56  ;;  %v1117_v47 = vsel %vm1087_vm14, %v1086_v13, 0.0  ;;  %vm1132_vm1 = vcmp.eq.s32.totalorder %v2146_v25, 0 }
  0x95   : > { %v815_v58 = vsel %vm809_vm0, %v743_v8, %v619_v48  ;;  %v842_v27 = vmul.f32 %v1876_v46, %v814_v23  ;;  %v1115_v50 = vsel %vm1087_vm14, %v1085_v60, 0.0  ;;  %v1131_v0 = vand.u32 127, %v2145_v22 }
  0x96   : > { %v1112_v31 = vadd.f32 %v1111_v43, %v1110_v44  ;;  %v843_v12 = vmul.f32 %v1879_v53, %v815_v58 }
  0x97   : > { %vm1133_vm2 = vcmp.eq.s32.totalorder %v1131_v0, 0  ;;  %vm1137_vm3 = vcmp.eq.s32.totalorder %v1131_v0, 1  ;;  %vm1142_vm6 = vcmp.eq.s32.totalorder %v1131_v0, 2  ;;  %vm1147_vm7 = vcmp.eq.s32.totalorder %v1131_v0, 3 }
  0x98   : > { %v1114_v34 = vadd.f32 %v1113_v54, %v1112_v31  ;;  %v844_v52 = vadd.f32 %v843_v12, %v842_v27  ;;  %vm1134_vm4 = vmand %vm1132_vm1, %vm1133_vm2 }
  0x99   : > { %vm1138_vm5 = vmand %vm1132_vm1, %vm1137_vm3 }
  0x9a   : > { %v1116_v3 = vadd.f32 %v1115_v50, %v1114_v34  ;;  %845 = vadd.xlane.f32.xlu0 %v844_v52  ;;  %vm1143_vm8 = vmand %vm1132_vm1, %vm1142_vm6 }
  0x9b   : > { %vm1148_vm9 = vmand %vm1132_vm1, %vm1147_vm7 }
  0x9c   : > { %v1118_v33 = vadd.f32 %v1117_v47, %v1116_v3 }
  0x9e   : > { %1119 = vadd.xlane.f32.xlu1 %v1118_v33 }
  0xdb   : > { %v856_v46 = vpop.xlane.xlu1 %855 }
  0xdc   : > { %v857_v53 = vrot.slane %v856_v46, 4 }
  0xde   : > { %v858_v37 = vadd.f32 %v857_v53, %v856_v46 }
  0xe0   : > { %v859_v21 = vrot.slane %v858_v37, 2 }
  0xe2   : > { %v860_v16 = vadd.f32 %v859_v21, %v858_v37 }
  0xe4   : > { %v861_v62 = vrot.slane %v860_v16, 1 }
  0xe6   : > { %v862_v41 = vadd.f32 %v861_v62, %v860_v16 }
 0x112   : > { %v834_v39 = vpop.xlane.xlu0 %833 }
 0x113   : > { %v835_v6 = vrot.slane %v834_v39, 4 }
 0x115   : > { %v836_v15 = vadd.f32 %v835_v6, %v834_v39 }
 0x117   : > { %v837_v30 = vrot.slane %v836_v15, 2 }
 0x119   : > { %v838_v1 = vadd.f32 %v837_v30, %v836_v15 }
 0x11b   : > { %v839_v19 = vrot.slane %v838_v1, 1 }
 0x11d   : > { %v840_v26 = vadd.f32 %v839_v19, %v838_v1 }
 0x11f   : > { %1399 = vpush %v840_v26 }
 0x127   : > { %v846_v17 = vpop.xlane.xlu0 %845 }
 0x128   : > { %v847_v2 = vrot.slane %v846_v17, 4 }
 0x12a   : > { %v848_v61 = vadd.f32 %v847_v2, %v846_v17 }
 0x12b   : > { %v1120_v10 = vpop.xlane.xlu1 %1119 }
 0x12c   : > { %v1121_v59 = vrot.slane %v1120_v10, 4  ;;  %v849_v14 = vrot.slane %v848_v61, 2 }
 0x12e   : > { %v1122_v51 = vadd.f32 %v1121_v59, %v1120_v10  ;;  %v850_v24 = vadd.f32 %v849_v14, %v848_v61 }
 0x130   : > { %v1123_v36 = vrot.slane %v1122_v51, 2  ;;  %v851_v9 = vrot.slane %v850_v24, 1 }
 0x132   : > { %v1124_v55 = vadd.f32 %v1123_v36, %v1122_v51  ;;  %v852_v40 = vadd.f32 %v851_v9, %v850_v24 }
 0x134   : > { %1401 = vpush %v852_v40  ;;  %v1125_v63 = vrot.slane %v1124_v55, 1 }
 0x135   : > { %1403 = vpush %v862_v41 }
 0x136   : > { %v1126_v18 = vadd.f32 %v1125_v63, %v1124_v55 }
 0x138   : > { %1405 = vpush %v1126_v18 }
 0x150   : > { %s1400_s22 = spop %1399 }
 0x151   : > { %v1135_v32 = vstv %s1400_s22 }
 0x152   : > { %v1136_v29 = vsel %vm1134_vm4, %v1135_v32, 0.0 }
 0x165   : > { %s1402_s23 = spop %1401 }
 0x166   : > { %s1404_s29 = spop %1403  ;;  %v1149_v56 = vstv %s1402_s23 }
 0x167   : > { %v1139_v4 = vstv %s1404_s29  ;;  %v1150_v48 = vsel %vm1148_vm9, %v1149_v56, 0.0 }
 0x168   : > { %v1140_v57 = vsel %vm1138_vm5, %v1139_v4, 0.0 }
 0x169   : > { %v1141_v5 = vadd.f32 %v1140_v57, %v1136_v29  ;;  %s1406_s30 = spop %1405 }
 0x16a   : > { %v1144_v11 = vstv %s1406_s30 }
 0x16b   : > { %v1145_v45 = vsel %vm1143_vm8, %v1144_v11, 0.0 }
 0x16c   : > { %v1146_v28 = vadd.f32 %v1145_v45, %v1141_v5 }
 0x16e   : > { %v1151_v42 = vadd.f32 %v1150_v48, %v1146_v28 }
 0x170   : > { %1152 = vst [vmem:[%s563_s11] sm:$0xff] %v1151_v42 }
 0x171 PF: > { %p14_p10 = scmp.ge.s32.totalorder %s1524_s28, 4   ;;  %s2147_s24 = smov %s1458_s25 }
 0x172   : > { %s2148_s25 = smov %s1533_s8  ;;  %s2149_s26 = smov %s1524_s28 }
 0x173   :  { %16 = sbr.rel (!%p14_p10) target bundleno = 2 (0x2), region = 239 }

</bundles_post_ra>
